<compile_context>
chip_gen: v5e
topology: v5e:2x2
jax: 0.10.0
libtpu: 0.0.40
codegen_flags: <defaults>
</compile_context>

<pallas_src>
import jax
import jax.numpy as jnp
from jax.experimental import pallas as pl
from jax.experimental.pallas import tpu as pltpu


# ----------------------------------------------------------------------------
# Kernel
# ----------------------------------------------------------------------------
def _resblock_kernel(x_ref, w_ref, p_ref, o_ref):
    x = x_ref[...]                      # (tile_m, D), input dtype (f32 or bf16)
    w = w_ref[...]                      # (D, D) = W^T, already in matmul dtype

    # f32 copy for residual / LayerNorm math (v5e VPU/EUP have no bf16).
    xf = x if x.dtype == jnp.float32 else x.astype(jnp.float32)
    # Matmul operand in the weight's dtype (bf16 fast path or f32 exact path).
    xm = x if x.dtype == w.dtype else x.astype(w.dtype)

    # Packed parameters (f32): row 0 = bias, row 1 = gamma, row 2 = beta.
    bias = p_ref[0:1, :]
    gamma = p_ref[1:2, :]
    beta = p_ref[2:3, :]

    # Linear (+ bias) on the MXU, f32 accumulation.
    y = jnp.dot(xm, w, preferred_element_type=jnp.float32) + bias

    # Swish: y * sigmoid(y), sigmoid via a single EUP tanh:
    #   sigmoid(y) = 0.5 * tanh(0.5 * y) + 0.5   (muls/adds ride free on the VPU)
    y = y * (0.5 * jnp.tanh(0.5 * y) + 0.5)

    # Residual (input_dim == output_dim).
    y = xf + y

    # LayerNorm over the feature dim — one-pass statistics.
    # s1 (row sum) on the otherwise-idle MXU, s2 on the XLU: halves XLU pushes.
    d = y.shape[-1]
    inv_d = 1.0 / d
    ones_col = jnp.ones((d, 1), dtype=jnp.float32)
    s1 = jnp.dot(y, ones_col, preferred_element_type=jnp.float32)   # (tile_m, 1)
    s2 = jnp.sum(y * y, axis=-1, keepdims=True)                     # (tile_m, 1)
    mean = s1 * inv_d
    var = jnp.maximum(s2 * inv_d - mean * mean, 0.0)   # clamp cancellation noise
    y_norm = (y - mean) * jax.lax.rsqrt(var + 1e-5)

    o_ref[...] = (y_norm * gamma + beta).astype(o_ref.dtype)


# ----------------------------------------------------------------------------
# Hardware / tile selection helpers
# ----------------------------------------------------------------------------
def _num_tensorcores():
    """Best-effort TensorCore-per-chip count (v5e/v6e = 1, v7x = 2)."""
    try:  # hardware detection only; never gates a differently-compiled kernel
        dev = jax.devices()[0]
        nc = getattr(dev, "num_cores", None)
        if nc:
            return int(nc)
        kind = (getattr(dev, "device_kind", "") or "").lower()
        if "v7" in kind:
            return 2
    except Exception:
        pass
    return 1


def _choose_tile_m(B, D, vmem_budget_bytes, num_cores):
    bpe = 4  # f32 bytes (the streaming tiles are at most f32)
    b_pad = max(8, ((B + 7) // 8) * 8)
    # Resident (non-streaming) buffers, default double-buffered by the pipeline:
    # weight (D,D) + packed params padded to (8, max(D,128)).
    resident = 2 * D * D * bpe + 2 * 8 * max(D, 128) * bpe
    budget = int(0.7 * vmem_budget_bytes) - resident
    per_row = 4 * D * bpe                       # x tile + out tile, double-buffered
    tile = max(8, budget // per_row) if per_row > 0 else 8
    # Single-TC chips: biggest tile that fits (whole batch if possible, knee ~1k rows).
    tile = min(tile, 1024, b_pad)
    if num_cores >= 2 and B > 8:
        # v7x megacore: split the "parallel" batch axis into exactly num_cores
        # grid steps for small B so every TensorCore gets work.
        per_core = ((pl.cdiv(B, num_cores) + 7) // 8) * 8
        tile = min(tile, per_core)
    return max(8, (tile // 8) * 8)


# ----------------------------------------------------------------------------
# Wrapper
# ----------------------------------------------------------------------------
def resblock_forward(x, weight, bias, gamma, beta, *, tile_m=None,
                     matmul_dtype=None, out_dtype=None,
                     vmem_limit_bytes=None, num_cores=None):
    """ResBlock forward.

    x:      [B, D] float32 (or bfloat16 for the low-HBM activation path)
    weight: [D, D] torch nn.Linear layout ([out_features, in_features])
    bias, gamma, beta: [D] (or [1, D])
    matmul_dtype: None (f32 MXU) or jnp.bfloat16 (fast MXU path, f32 accumulation)
    out_dtype:    None -> x.dtype
    """
    B, D = x.shape
    assert weight.shape == (D, D), "residual path requires input_dim == output_dim"

    w_t = jnp.transpose(weight)                  # [in, out] so kernel computes x @ W^T
    if matmul_dtype is not None:
        w_t = w_t.astype(matmul_dtype)           # cast ONCE here, not per grid step
    params = jnp.stack(
        [bias.reshape(D), gamma.reshape(D), beta.reshape(D)], axis=0
    ).astype(jnp.float32)                        # (3, D): one operand, one DMA stream

    if num_cores is None:
        num_cores = _num_tensorcores()
    budget = vmem_limit_bytes if vmem_limit_bytes is not None else 16 * 1024 * 1024
    if tile_m is None:
        tile_m = _choose_tile_m(B, D, budget, num_cores)
    grid = (pl.cdiv(B, tile_m),)
    out_dtype = out_dtype or x.dtype

    compiler_kwargs = dict(dimension_semantics=("parallel",))  # megacore shards batch
    if vmem_limit_bytes is not None:
        compiler_kwargs["vmem_limit_bytes"] = vmem_limit_bytes

    return pl.pallas_call(
        _resblock_kernel,
        out_shape=jax.ShapeDtypeStruct((B, D), out_dtype),
        grid_spec=pltpu.PrefetchScalarGridSpec(
            num_scalar_prefetch=0,
            grid=grid,
            in_specs=[
                pl.BlockSpec((tile_m, D), lambda i: (i, 0)),   # x tile (streams)
                pl.BlockSpec((D, D), lambda i: (0, 0)),        # weight (resident)
                pl.BlockSpec((3, D), lambda i: (0, 0)),        # bias/gamma/beta
            ],
            out_specs=pl.BlockSpec((tile_m, D), lambda i: (i, 0)),
        ),
        compiler_params=pltpu.CompilerParams(**compiler_kwargs),
    )(x, w_t, params)


# ----------------------------------------------------------------------------
# Pure-JAX reference (torch-layout weight, eval-mode Dropout = identity)
# ----------------------------------------------------------------------------
def resblock_reference(x, weight, bias, gamma, beta):
    y = jnp.dot(x, weight.T, precision=jax.lax.Precision.HIGHEST) + bias
    y = y * jax.nn.sigmoid(y)
    y = x + y
    mean = jnp.mean(y, axis=-1, keepdims=True)
    var = jnp.mean((y - mean) ** 2, axis=-1, keepdims=True)
    y = (y - mean) / jnp.sqrt(var + 1e-5)
    return y * gamma + beta


if __name__ == "__main__":
    # Lane-dense shapes: hidden dim D=128 (full 128-lane stores), batch B=256.
    # Single-TC chips run this as 1 grid step; v7x runs 2 steps (one per core).
    B, D = 256, 128
    key = jax.random.PRNGKey(0)
    kx, kw, kb = jax.random.split(key, 3)

    x = jax.random.normal(kx, (B, D), dtype=jnp.float32)

    # Roughly nn.Linear's uniform init scale; weight kept in torch [out, in] layout.
    bound = 1.0 / (D ** 0.5)
    weight = jax.random.uniform(kw, (D, D), minval=-bound, maxval=bound,
                                dtype=jnp.float32)
    bias = jax.random.uniform(kb, (D,), minval=-bound, maxval=bound,
                              dtype=jnp.float32)
    gamma = jnp.ones((D,), dtype=jnp.float32)   # LayerNorm weight init
    beta = jnp.zeros((D,), dtype=jnp.float32)   # LayerNorm bias init

    ref = resblock_reference(x, weight, bias, gamma, beta)

    # 1) f32 MXU path (default).
    out = resblock_forward(x, weight, bias, gamma, beta)
    out = jax.block_until_ready(out)
    assert out.shape == (B, D)
    assert jnp.allclose(out, ref, atol=1e-4, rtol=1e-3), "f32 path mismatch vs reference"

    # 2) bf16 MXU throughput path (weight cast once in the wrapper).
    out_bf16 = resblock_forward(x, weight, bias, gamma, beta,
                                matmul_dtype=jnp.bfloat16)
    out_bf16 = jax.block_until_ready(out_bf16)
    assert jnp.allclose(out_bf16, ref, atol=5e-2, rtol=5e-2), "bf16 matmul path mismatch"

    # 3) bf16 activation/output path (halves x/out HBM traffic; math stays f32).
    x_bf16 = x.astype(jnp.bfloat16)
    ref_bf16_in = resblock_reference(x_bf16.astype(jnp.float32), weight, bias, gamma, beta)
    out_io = resblock_forward(x_bf16, weight, bias, gamma, beta,
                              matmul_dtype=jnp.bfloat16, out_dtype=jnp.bfloat16)
    out_io = jax.block_until_ready(out_io)
    assert out_io.dtype == jnp.bfloat16
    assert jnp.allclose(out_io.astype(jnp.float32), ref_bf16_in,
                        atol=7e-2, rtol=7e-2), "bf16 I/O path mismatch"

    print("KERNEL_OK")
</pallas_src>

<mosaic_0001>
module attributes {stable_mosaic.version = 11 : i64} {
  func.func @_resblock_kernel(%arg0: i32, %arg1: memref<256x128xf32, #tpu.memory_space<vmem>>, %arg2: memref<128x128xf32, #tpu.memory_space<vmem>>, %arg3: memref<3x128xf32, #tpu.memory_space<vmem>>, %arg4: memref<256x128xf32, #tpu.memory_space<vmem>>) attributes {dimension_semantics = [#tpu.dimension_semantics<parallel>], iteration_bounds = array<i64: 1>, scalar_prefetch = 0 : i64, scratch_operands = 0 : i64, tpu.core_type = #tpu.core_type<tc>, window_params = [{transform_indices = @transform_0, window_bounds = array<i64: 256, 128>}, {pipeline_mode = #tpu.pipeline_mode<synchronous>, transform_indices = @transform_1, window_bounds = array<i64: 128, 128>}, {pipeline_mode = #tpu.pipeline_mode<synchronous>, transform_indices = @transform_2, window_bounds = array<i64: 3, 128>}, {transform_indices = @transform_3, window_bounds = array<i64: 256, 128>}]} {
    %c0 = arith.constant 0 : index
    %c0_0 = arith.constant 0 : index
    %0 = vector.load %arg1[%c0, %c0_0] : memref<256x128xf32, #tpu.memory_space<vmem>>, vector<256x128xf32>
    %c0_1 = arith.constant 0 : index
    %c0_2 = arith.constant 0 : index
    %1 = vector.load %arg2[%c0_1, %c0_2] : memref<128x128xf32, #tpu.memory_space<vmem>>, vector<128x128xf32>
    %c0_3 = arith.constant 0 : index
    %c0_4 = arith.constant 0 : index
    %2 = vector.load %arg3[%c0_3, %c0_4] : memref<3x128xf32, #tpu.memory_space<vmem>>, vector<1x128xf32>
    %c1 = arith.constant 1 : index
    %c0_5 = arith.constant 0 : index
    %3 = vector.load %arg3[%c1, %c0_5] : memref<3x128xf32, #tpu.memory_space<vmem>>, vector<1x128xf32>
    %c2 = arith.constant 2 : index
    %c0_6 = arith.constant 0 : index
    %4 = vector.load %arg3[%c2, %c0_6] : memref<3x128xf32, #tpu.memory_space<vmem>>, vector<1x128xf32>
    %cst = arith.constant dense<0.000000e+00> : vector<256x128xf32>
    %5 = tpu.matmul %0, %1, %cst {dimension_numbers = #tpu.dot_dimension_numbers<[1], [0], [0], [1], [0, 0, 1, 1], [], []>} : vector<256x128xf32>, vector<128x128xf32>, vector<256x128xf32> -> vector<256x128xf32>
    %6 = vector.broadcast %2 : vector<1x128xf32> to vector<256x128xf32>
    %7 = arith.addf %5, %6 : vector<256x128xf32>
    %cst_7 = arith.constant 5.000000e-01 : f32
    %8 = vector.broadcast %cst_7 : f32 to vector<256x128xf32>
    %9 = arith.mulf %8, %7 : vector<256x128xf32>
    %10 = math.tanh %9 : vector<256x128xf32>
    %cst_8 = arith.constant 5.000000e-01 : f32
    %11 = vector.broadcast %cst_8 : f32 to vector<256x128xf32>
    %12 = arith.mulf %11, %10 : vector<256x128xf32>
    %cst_9 = arith.constant 5.000000e-01 : f32
    %13 = vector.broadcast %cst_9 : f32 to vector<256x128xf32>
    %14 = arith.addf %12, %13 : vector<256x128xf32>
    %15 = arith.mulf %7, %14 : vector<256x128xf32>
    %16 = arith.addf %0, %15 : vector<256x128xf32>
    %cst_10 = arith.constant 1.000000e+00 : f32
    %17 = vector.broadcast %cst_10 : f32 to vector<128x1xf32>
    %cst_11 = arith.constant dense<0.000000e+00> : vector<256x1xf32>
    %18 = tpu.matmul %16, %17, %cst_11 {dimension_numbers = #tpu.dot_dimension_numbers<[1], [0], [0], [1], [0, 0, 1, 1], [], []>} : vector<256x128xf32>, vector<128x1xf32>, vector<256x1xf32> -> vector<256x1xf32>
    %19 = arith.mulf %16, %16 : vector<256x128xf32>
    %cst_12 = arith.constant dense<0.000000e+00> : vector<256xf32>
    %20 = vector.multi_reduction <add>, %19, %cst_12 [1] : vector<256x128xf32> to vector<256xf32>
    %21 = vector.shape_cast %20 : vector<256xf32> to vector<256x1xf32>
    %cst_13 = arith.constant 7.812500e-03 : f32
    %22 = vector.broadcast %cst_13 : f32 to vector<256x1xf32>
    %23 = arith.mulf %18, %22 : vector<256x1xf32>
    %cst_14 = arith.constant 7.812500e-03 : f32
    %24 = vector.broadcast %cst_14 : f32 to vector<256x1xf32>
    %25 = arith.mulf %21, %24 : vector<256x1xf32>
    %26 = arith.mulf %23, %23 : vector<256x1xf32>
    %27 = arith.subf %25, %26 : vector<256x1xf32>
    %cst_15 = arith.constant 0.000000e+00 : f32
    %28 = vector.broadcast %cst_15 : f32 to vector<256x1xf32>
    %29 = arith.maximumf %27, %28 : vector<256x1xf32>
    %30 = vector.broadcast %23 : vector<256x1xf32> to vector<256x128xf32>
    %31 = arith.subf %16, %30 : vector<256x128xf32>
    %cst_16 = arith.constant 9.99999974E-6 : f32
    %32 = vector.broadcast %cst_16 : f32 to vector<256x1xf32>
    %33 = arith.addf %29, %32 : vector<256x1xf32>
    %34 = math.rsqrt %33 : vector<256x1xf32>
    %35 = vector.broadcast %34 : vector<256x1xf32> to vector<256x128xf32>
    %36 = arith.mulf %31, %35 : vector<256x128xf32>
    %37 = vector.broadcast %3 : vector<1x128xf32> to vector<256x128xf32>
    %38 = arith.mulf %36, %37 : vector<256x128xf32>
    %39 = vector.broadcast %4 : vector<1x128xf32> to vector<256x128xf32>
    %40 = arith.addf %38, %39 : vector<256x128xf32>
    %c0_17 = arith.constant 0 : index
    %c0_18 = arith.constant 0 : index
    %41 = vector.load %arg4[%c0_17, %c0_18] : memref<256x128xf32, #tpu.memory_space<vmem>>, vector<256x128xf32>
    tpu.vector_store %arg4[%c0_17, %c0_18], %40 {strides = array<i32>} : memref<256x128xf32, #tpu.memory_space<vmem>>, vector<256x128xf32>,
    return
  }
  func.func @transform_0(%arg0: i32) -> (i32, i32) {
    %c0_i32 = arith.constant 0 : i32
    %c0_i32_0 = arith.constant 0 : i32
    return %arg0, %c0_i32 : i32, i32
  }
  func.func @transform_1(%arg0: i32) -> (i32, i32) {
    %c0_i32 = arith.constant 0 : i32
    %c0_i32_0 = arith.constant 0 : i32
    %c0_i32_1 = arith.constant 0 : i32
    return %c0_i32, %c0_i32_0 : i32, i32
  }
  func.func @transform_2(%arg0: i32) -> (i32, i32) {
    %c0_i32 = arith.constant 0 : i32
    %c0_i32_0 = arith.constant 0 : i32
    %c0_i32_1 = arith.constant 0 : i32
    return %c0_i32, %c0_i32_0 : i32, i32
  }
  func.func @transform_3(%arg0: i32) -> (i32, i32) {
    %c0_i32 = arith.constant 0 : i32
    %c0_i32_0 = arith.constant 0 : i32
    return %arg0, %c0_i32 : i32, i32
  }
}

</mosaic_0001>

<bundles_post_ra>
// kernel: tpu_custom_call.1
= control target key start
LH: loop header
LB: loop body
LE: loop exit
PB: predicated region body
PF: predicated region fallthrough
CT: control target
= control target key end

     0   :  { %8 = vsyncpa [#allocation3], 0  ;;  %s2989_s0 = inlined_call_operand.hbm [shape: f32[256,128], index: 0, kind: input, shape index: {}]   ;;  %s2990_s1 = inlined_call_operand.hbm [shape: f32[128,128], index: 1, kind: input, shape index: {}]   ;;  %s2991_s2 = inlined_call_operand.hbm [shape: f32[3,128], index: 2, kind: input, shape index: {}]   ;;  %s2992_s3 = inlined_call_operand.hbm [shape: f32[256,128], index: 3, kind: output, shape index: {}]  }
   0x1   :  { %9 = vsyncpa [#allocation6], 0 }
   0x2   :  { %10 = vsyncpa [#allocation4], 0  ;;  %s28_s14 = sshll.u32 %s2990_s1, 4  ;;  %s1916_s15 = smov [#allocation5]   ;;  %s29_s14 = int_to_ptr.hbm [resolvable:$true] %s28_s14 }
   0x3   :  { %s30_s16 = sshll.u32 %s1916_s15, 4  ;;  %s15_s19 = sshll.u32 %s2989_s0, 4  ;;  %s31_s16 = int_to_ptr.vmem [resolvable:$true] %s30_s16  ;;  %s16_s19 = int_to_ptr.hbm [resolvable:$true] %s15_s19 }
   0x4   :  { %s1917_s20 = smov 128   ;;  %s1918_s21 = smov 8  }
   0x5   :  { %36 = dma.hbm_to_vmem [thread:$0]  %s29_s14, 2048, %s31_s16, [#allocation6], %s1917_s20, %s1917_s20, %s1918_s21  }
   0x6   :  { %s1919_s22 = smov [#allocation2]   ;;  %s42_s1 = sshll.u32 %s2991_s2, 4  ;;  %s43_s1 = int_to_ptr.hbm [resolvable:$true] %s42_s1 }
   0x7   :  { %s17_s23 = sshll.u32 %s1919_s22, 4  ;;  %s1920_s0 = smov [#allocation7]   ;;  %s18_s23 = int_to_ptr.vmem [resolvable:$true] %s17_s23 }
   0x8   :  { %23 = dma.hbm_to_vmem [thread:$0]  %s16_s19, 4096, %s18_s23, [#allocation3], %s1917_s20, %s1917_s20, %s1918_s21  }
   0x9   :  { %s44_s26 = sshll.u32 %s1920_s0, 4  ;;  %s45_s26 = int_to_ptr.vmem [resolvable:$true] %s44_s26 }
   0xa   :  { %47 = dma.hbm_to_vmem [thread:$0]  %s43_s1, 64, %s45_s26, [#allocation6]  }
   0xb   :  { %1910 = dma.done.wait [#allocation3], 4096  }
   0xc   :  { %1911 = vsyncadd [#allocation3], 4294963200 }
   0xd   :  { %1912 = dma.done.wait [#allocation6], 2112  }
   0xe   :  { %1913 = vsyncadd [#allocation6], 4294965184  ;;  %v107_v0 = vld [vmem:[#allocation5 + $0x78] sm:$0xff]  ;;  %v106_v1 = vld [vmem:[#allocation5 + $0x70] sm:$0xff]  ;;  %v1921_v38 = vmov 1.0   ;;  %s1923_s2 = smov [#allocation8]  }
   0xf   :  { %112 = vmatpush.msra.mxu0 %v107_v0  ;;  %1640 = vmatpush.msra.mxu2 %v107_v0  ;;  %v105_v2 = vld [vmem:[#allocation5 + $0x68] sm:$0xff]  ;;  %v104_v3 = vld [vmem:[#allocation5 + $0x60] sm:$0xff]  ;;  %v103_v4 = vld [vmem:[#allocation5 + $0x58] sm:$0xff]  ;;  %s1624_s27 = sshll.u32 %s1923_s2, 4  ;;  %s1626_s30 = sshll.u32 %s2992_s3, 4  ;;  %s1625_s27 = int_to_ptr.vmem [resolvable:$true] %s1624_s27  ;;  %s1627_s30 = int_to_ptr.hbm [resolvable:$true] %s1626_s30 }
  0x10   :  { %v102_v5 = vld [vmem:[#allocation5 + $0x50] sm:$0xff]  ;;  %v101_v6 = vld [vmem:[#allocation5 + $0x48] sm:$0xff]  ;;  %v100_v7 = vld [vmem:[#allocation5 + $0x40] sm:$0xff]  ;;  %417 = vmatpush.msra.mxu1 %v1921_v38  ;;  %1656 = vmatpush.msra.mxu3 %v1921_v38 }
  0x11   :  { %113 = vmatpush.msra.mxu0 %v106_v1  ;;  %1641 = vmatpush.msra.mxu2 %v106_v1  ;;  %v99_v8 = vld [vmem:[#allocation5 + $0x38] sm:$0xff]  ;;  %v98_v9 = vld [vmem:[#allocation5 + $0x30] sm:$0xff]  ;;  %v97_v10 = vld [vmem:[#allocation5 + $0x28] sm:$0xff] }
  0x12   :  { %v96_v11 = vld [vmem:[#allocation5 + $0x20] sm:$0xff]  ;;  %v95_v12 = vld [vmem:[#allocation5 + $0x18] sm:$0xff]  ;;  %v94_v13 = vld [vmem:[#allocation5 + $0x10] sm:$0xff]  ;;  %418 = vmatpush.msra.mxu1 %v1921_v38  ;;  %1657 = vmatpush.msra.mxu3 %v1921_v38 }
  0x13   :  { %114 = vmatpush.msra.mxu0 %v105_v2  ;;  %1642 = vmatpush.msra.mxu2 %v105_v2  ;;  %v93_v14 = vld [vmem:[#allocation5 + $0x8] sm:$0xff]  ;;  %v92_v15 = vld [vmem:[#allocation5] sm:$0xff]  ;;  %v1971_v20 = vld [vmem:[#allocation2 + $0x10] sm:$0xff] }
  0x14   :  { %v1959_v16 = vld [vmem:[#allocation2] sm:$0xff]  ;;  %v1965_v18 = vld [vmem:[#allocation2 + $0x8] sm:$0xff]  ;;  %v1973_v21 = vld [vmem:[#allocation2 + $0x90] sm:$0xff]  ;;  %419 = vmatpush.msra.mxu1 %v1921_v38  ;;  %1658 = vmatpush.msra.mxu3 %v1921_v38 }
  0x15   :  { %115 = vmatpush.msra.mxu0 %v104_v3  ;;  %1643 = vmatpush.msra.mxu2 %v104_v3  ;;  %v1961_v17 = vld [vmem:[#allocation2 + $0x80] sm:$0xff]  ;;  %v1967_v19 = vld [vmem:[#allocation2 + $0x88] sm:$0xff]  ;;  %v1977_v22 = vld [vmem:[#allocation2 + $0x18] sm:$0xff] }
  0x16   :  { %v1979_v23 = vld [vmem:[#allocation2 + $0x98] sm:$0xff]  ;;  %v1983_v24 = vld [vmem:[#allocation2 + $0x20] sm:$0xff]  ;;  %v1989_v26 = vld [vmem:[#allocation2 + $0x28] sm:$0xff]  ;;  %420 = vmatpush.msra.mxu1 %v1921_v38  ;;  %1659 = vmatpush.msra.mxu3 %v1921_v38 }
  0x17   :  { %116 = vmatpush.msra.mxu0 %v103_v4  ;;  %1644 = vmatpush.msra.mxu2 %v103_v4  ;;  %v1985_v25 = vld [vmem:[#allocation2 + $0xa0] sm:$0xff]  ;;  %v1991_v27 = vld [vmem:[#allocation2 + $0xa8] sm:$0xff]  ;;  %v1995_v28 = vld [vmem:[#allocation2 + $0x30] sm:$0xff] }
  0x18   :  { %v1997_v29 = vld [vmem:[#allocation2 + $0xb0] sm:$0xff]  ;;  %v2001_v30 = vld [vmem:[#allocation2 + $0x38] sm:$0xff]  ;;  %v2007_v32 = vld [vmem:[#allocation2 + $0x40] sm:$0xff]  ;;  %421 = vmatpush.msra.mxu1 %v1921_v38  ;;  %1660 = vmatpush.msra.mxu3 %v1921_v38 }
  0x19   :  { %117 = vmatpush.msra.mxu0 %v102_v5  ;;  %1645 = vmatpush.msra.mxu2 %v102_v5  ;;  %v2003_v31 = vld [vmem:[#allocation2 + $0xb8] sm:$0xff]  ;;  %v2009_v33 = vld [vmem:[#allocation2 + $0xc0] sm:$0xff]  ;;  %v2013_v34 = vld [vmem:[#allocation2 + $0x48] sm:$0xff] }
  0x1a   :  { %v2015_v35 = vld [vmem:[#allocation2 + $0xc8] sm:$0xff]  ;;  %v2019_v36 = vld [vmem:[#allocation2 + $0x50] sm:$0xff]  ;;  %v2025_v39 = vld [vmem:[#allocation2 + $0x58] sm:$0xff]  ;;  %422 = vmatpush.msra.mxu1 %v1921_v38  ;;  %1661 = vmatpush.msra.mxu3 %v1921_v38 }
  0x1b   :  { %118 = vmatpush.msra.mxu0 %v101_v6  ;;  %1646 = vmatpush.msra.mxu2 %v101_v6  ;;  %v2021_v37 = vld [vmem:[#allocation2 + $0xd0] sm:$0xff]  ;;  %v2027_v40 = vld [vmem:[#allocation2 + $0xd8] sm:$0xff]  ;;  %v2031_v41 = vld [vmem:[#allocation2 + $0x60] sm:$0xff] }
  0x1c   :  { %v2033_v42 = vld [vmem:[#allocation2 + $0xe0] sm:$0xff]  ;;  %423 = vmatpush.msra.mxu1 %v1921_v38  ;;  %1662 = vmatpush.msra.mxu3 %v1921_v38  ;;  %v2037_v43 = vld [vmem:[#allocation2 + $0x68] sm:$0xff]  ;;  %v2043_v45 = vld [vmem:[#allocation2 + $0x70] sm:$0xff] }
  0x1d   :  { %119 = vmatpush.msra.mxu0 %v100_v7  ;;  %1647 = vmatpush.msra.mxu2 %v100_v7  ;;  %v2039_v44 = vld [vmem:[#allocation2 + $0xe8] sm:$0xff]  ;;  %v2045_v46 = vld [vmem:[#allocation2 + $0xf0] sm:$0xff]  ;;  %v2049_v47 = vld [vmem:[#allocation2 + $0x78] sm:$0xff] }
  0x1e   :  { %424 = vmatpush.msra.mxu1 %v1921_v38  ;;  %1663 = vmatpush.msra.mxu3 %v1921_v38  ;;  %v2051_v48 = vld [vmem:[#allocation2 + $0xf8] sm:$0xff]  ;;  %v2055_v49 = vld [vmem:[#allocation7] ss:$0 sm:$0xff] }
  0x1f   :  { %120 = vmatpush.msra.mxu0 %v99_v8  ;;  %1648 = vmatpush.msra.mxu2 %v99_v8 }
  0x20   :  { %425 = vmatpush.msra.mxu1 %v1921_v38  ;;  %1664 = vmatpush.msra.mxu3 %v1921_v38 }
  0x21   :  { %121 = vmatpush.msra.mxu0 %v98_v9  ;;  %1649 = vmatpush.msra.mxu2 %v98_v9 }
  0x22   :  { %426 = vmatpush.msra.mxu1 %v1921_v38  ;;  %1665 = vmatpush.msra.mxu3 %v1921_v38 }
  0x23   :  { %122 = vmatpush.msra.mxu0 %v97_v10  ;;  %1650 = vmatpush.msra.mxu2 %v97_v10 }
  0x24   :  { %427 = vmatpush.msra.mxu1 %v1921_v38  ;;  %1666 = vmatpush.msra.mxu3 %v1921_v38 }
  0x25   :  { %123 = vmatpush.msra.mxu0 %v96_v11  ;;  %1651 = vmatpush.msra.mxu2 %v96_v11 }
  0x26   :  { %428 = vmatpush.msra.mxu1 %v1921_v38  ;;  %1667 = vmatpush.msra.mxu3 %v1921_v38 }
  0x27   :  { %124 = vmatpush.msra.mxu0 %v95_v12  ;;  %1652 = vmatpush.msra.mxu2 %v95_v12 }
  0x28   :  { %429 = vmatpush.msra.mxu1 %v1921_v38  ;;  %1668 = vmatpush.msra.mxu3 %v1921_v38 }
  0x29   :  { %125 = vmatpush.msra.mxu0 %v94_v13  ;;  %1653 = vmatpush.msra.mxu2 %v94_v13 }
  0x2a   :  { %430 = vmatpush.msra.mxu1 %v1921_v38  ;;  %1669 = vmatpush.msra.mxu3 %v1921_v38 }
  0x2b   :  { %126 = vmatpush.msra.mxu0 %v93_v14  ;;  %1654 = vmatpush.msra.mxu2 %v93_v14 }
  0x2c   :  { %431 = vmatpush.msra.mxu1 %v1921_v38  ;;  %1670 = vmatpush.msra.mxu3 %v1921_v38 }
  0x2d   :  { %127 = vmatpush.msra.mxu0 %v92_v15  ;;  %1655 = vmatpush.msra.mxu2 %v92_v15 }
  0x2e   :  { %128 = vmatmul.f32.vlgmr.msra.gmra.mxu0 %v1959_v16  ;;  %176 = vmatmul.f32.vlgmr.msra.gmra.mxu2 %v1961_v17 }
  0x2f   :  { %432 = vmatpush.msra.mxu1 %v1921_v38  ;;  %1671 = vmatpush.msra.mxu3 %v1921_v38 }
  0x36   :  { %131 = vmatmul.f32.gmra.mxu0 %v1965_v18  ;;  %179 = vmatmul.f32.gmra.mxu2 %v1967_v19 }
  0x3e   :  { %134 = vmatmul.f32.gmra.mxu0 %v1971_v20  ;;  %182 = vmatmul.f32.gmra.mxu2 %v1973_v21 }
  0x46   :  { %137 = vmatmul.f32.gmra.mxu0 %v1977_v22  ;;  %185 = vmatmul.f32.gmra.mxu2 %v1979_v23 }
  0x4e   :  { %140 = vmatmul.f32.gmra.mxu0 %v1983_v24  ;;  %188 = vmatmul.f32.gmra.mxu2 %v1985_v25 }
  0x56   :  { %143 = vmatmul.f32.gmra.mxu0 %v1989_v26  ;;  %191 = vmatmul.f32.gmra.mxu2 %v1991_v27 }
  0x5e   :  { %146 = vmatmul.f32.gmra.mxu0 %v1995_v28  ;;  %194 = vmatmul.f32.gmra.mxu2 %v1997_v29 }
  0x66   :  { %149 = vmatmul.f32.gmra.mxu0 %v2001_v30  ;;  %197 = vmatmul.f32.gmra.mxu2 %v2003_v31 }
  0x6e   :  { %152 = vmatmul.f32.gmra.mxu0 %v2007_v32  ;;  %200 = vmatmul.f32.gmra.mxu2 %v2009_v33 }
  0x76   :  { %155 = vmatmul.f32.gmra.mxu0 %v2013_v34  ;;  %203 = vmatmul.f32.gmra.mxu2 %v2015_v35 }
  0x7e   :  { %158 = vmatmul.f32.gmra.mxu0 %v2019_v36  ;;  %206 = vmatmul.f32.gmra.mxu2 %v2021_v37 }
  0x86   :  { %161 = vmatmul.f32.gmra.mxu0 %v2025_v39  ;;  %209 = vmatmul.f32.gmra.mxu2 %v2027_v40 }
  0x8e   :  { %164 = vmatmul.f32.gmra.mxu0 %v2031_v41  ;;  %212 = vmatmul.f32.gmra.mxu2 %v2033_v42 }
  0x96   :  { %167 = vmatmul.f32.gmra.mxu0 %v2037_v43  ;;  %215 = vmatmul.f32.gmra.mxu2 %v2039_v44 }
  0x9e   :  { %170 = vmatmul.f32.gmra.mxu0 %v2043_v45  ;;  %218 = vmatmul.f32.gmra.mxu2 %v2045_v46 }
  0xa6   :  { %173 = vmatmul.f32.gmra.mxu0 %v2049_v47  ;;  %221 = vmatmul.f32.gmra.mxu2 %v2051_v48 }
  0xab   :  { %v129_v50 = vpop.f32.mrf.mxu0 }
  0xac   :  { %v130_v51 = vadd.f32 %v2055_v49, %v129_v50 }
  0xae   :  { %v225_v52 = vmul.f32 0.5, %v130_v51 }
  0xb0   :  { %1686 = vtanh.f32 %v225_v52 }
  0xb1   :  { %v177_v53 = vpop.f32.mrf.mxu2 }
  0xb2   :  { %v178_v54 = vadd.f32 %v2055_v49, %v177_v53 }
  0xb3   :  { %v132_v55 = vpop.f32.mrf.mxu0 }
  0xb4   :  { %v241_v56 = vmul.f32 0.5, %v178_v54  ;;  %v133_v57 = vadd.f32 %v2055_v49, %v132_v55 }
  0xb6   :  { %v1687_v58 = vpop.eup %1686  ;;  %1688 = vtanh.f32 %v241_v56  ;;  %v226_v59 = vmul.f32 0.5, %v133_v57 }
  0xb7   :  { %v289_v60 = vmul.f32 0.5, %v1687_v58 }
  0xb8   :  { %1690 = vtanh.f32 %v226_v59 }
  0xb9   :  { %v321_v61 = vadd.f32 0.5, %v289_v60  ;;  %v180_v62 = vpop.f32.mrf.mxu2 }
  0xba   :  { %v181_v63 = vadd.f32 %v2055_v49, %v180_v62 }
  0xbb   :  { %v353_v0 = vmul.f32 %v321_v61, %v130_v51  ;;  %v135_v1 = vpop.f32.mrf.mxu0 }
  0xbc   :  { %v1689_v2 = vpop.eup %1688  ;;  %v242_v3 = vmul.f32 0.5, %v181_v63  ;;  %v136_v4 = vadd.f32 %v2055_v49, %v135_v1 }
  0xbd   :  { %v305_v5 = vmul.f32 0.5, %v1689_v2  ;;  %v2063_v6 = vadd.f32 %v353_v0, %v1959_v16 }
  0xbe   :  { %v1691_v7 = vpop.eup %1690  ;;  %1692 = vtanh.f32 %v242_v3  ;;  %v227_v8 = vmul.f32 0.5, %v136_v4 }
  0xbf   :  { %v337_v9 = vadd.f32 0.5, %v305_v5  ;;  %v290_v10 = vmul.f32 0.5, %v1691_v7  ;;  %433 = vmatmul.f32.vlgmr.msra.gmra.mxu1 %v2063_v6  ;;  %v530_v11 = vmul.f32 %v2063_v6, %v2063_v6 }
  0xc0   :  { %1694 = vtanh.f32 %v227_v8 }
  0xc1   :  { %v369_v12 = vmul.f32 %v337_v9, %v178_v54  ;;  %v322_v13 = vadd.f32 0.5, %v290_v10  ;;  %v183_v14 = vpop.f32.mrf.mxu2  ;;  %562 = vadd.xlane.f32.xlu0 %v530_v11 }
  0xc2   :  { %v184_v15 = vadd.f32 %v2055_v49, %v183_v14 }
  0xc3   :  { %v354_v38 = vmul.f32 %v322_v13, %v133_v57  ;;  %v138_v16 = vpop.f32.mrf.mxu0  ;;  %v2070_v50 = vadd.f32 %v369_v12, %v1961_v17 }
  0xc4   :  { %v1693_v51 = vpop.eup %1692  ;;  %v243_v52 = vmul.f32 0.5, %v184_v15  ;;  %v139_v53 = vadd.f32 %v2055_v49, %v138_v16 }
  0xc5   :  { %v306_v55 = vmul.f32 0.5, %v1693_v51  ;;  %481 = vmatmul.f32.vlgmr.msra.gmra.mxu3 %v2070_v50  ;;  %v546_v54 = vmul.f32 %v2070_v50, %v2070_v50  ;;  %v2077_v56 = vadd.f32 %v354_v38, %v1965_v18 }
  0xc6   :  { %v1695_v58 = vpop.eup %1694  ;;  %1696 = vtanh.f32 %v243_v52  ;;  %v228_v57 = vmul.f32 0.5, %v139_v53 }
  0xc7   :  { %v338_v59 = vadd.f32 0.5, %v306_v55  ;;  %v291_v60 = vmul.f32 0.5, %v1695_v58  ;;  %594 = vadd.xlane.f32.xlu1 %v546_v54  ;;  %436 = vmatmul.f32.gmra.mxu1 %v2077_v56  ;;  %v531_v17 = vmul.f32 %v2077_v56, %v2077_v56 }
  0xc8   :  { %1698 = vtanh.f32 %v228_v57 }
  0xc9   :  { %v370_v61 = vmul.f32 %v338_v59, %v181_v63  ;;  %v323_v62 = vadd.f32 0.5, %v291_v60  ;;  %v186_v0 = vpop.f32.mrf.mxu2  ;;  %564 = vadd.xlane.f32.xlu0 %v531_v17 }
  0xca   :  { %v187_v1 = vadd.f32 %v2055_v49, %v186_v0 }
  0xcb   :  { %v355_v18 = vmul.f32 %v323_v62, %v136_v4  ;;  %v141_v2 = vpop.f32.mrf.mxu0  ;;  %v2084_v3 = vadd.f32 %v370_v61, %v1967_v19 }
  0xcc   :  { %v1697_v5 = vpop.eup %1696  ;;  %v244_v7 = vmul.f32 0.5, %v187_v1  ;;  %v142_v8 = vadd.f32 %v2055_v49, %v141_v2 }
  0xcd   :  { %v307_v9 = vmul.f32 0.5, %v1697_v5  ;;  %484 = vmatmul.f32.gmra.mxu3 %v2084_v3  ;;  %v547_v63 = vmul.f32 %v2084_v3, %v2084_v3  ;;  %v2091_v10 = vadd.f32 %v355_v18, %v1971_v20 }
  0xce   :  { %v1699_v11 = vpop.eup %1698  ;;  %1700 = vtanh.f32 %v244_v7  ;;  %v229_v4 = vmul.f32 0.5, %v142_v8 }
  0xcf   :  { %v339_v12 = vadd.f32 0.5, %v307_v9  ;;  %v292_v13 = vmul.f32 0.5, %v1699_v11  ;;  %596 = vadd.xlane.f32.xlu2 %v547_v63  ;;  %439 = vmatmul.f32.gmra.mxu1 %v2091_v10  ;;  %v532_v19 = vmul.f32 %v2091_v10, %v2091_v10 }
  0xd0   :  { %1702 = vtanh.f32 %v229_v4 }
  0xd1   :  { %v371_v14 = vmul.f32 %v339_v12, %v184_v15  ;;  %v324_v38 = vadd.f32 0.5, %v292_v13  ;;  %v189_v16 = vpop.f32.mrf.mxu2  ;;  %566 = vadd.xlane.f32.xlu1 %v532_v19 }
  0xd2   :  { %v190_v51 = vadd.f32 %v2055_v49, %v189_v16 }
  0xd3   :  { %v356_v20 = vmul.f32 %v324_v38, %v139_v53  ;;  %v144_v52 = vpop.f32.mrf.mxu0  ;;  %v2098_v55 = vadd.f32 %v371_v14, %v1973_v21 }
  0xd4   :  { %v1701_v54 = vpop.eup %1700  ;;  %v245_v58 = vmul.f32 0.5, %v190_v51  ;;  %v145_v57 = vadd.f32 %v2055_v49, %v144_v52 }
  0xd5   :  { %v308_v59 = vmul.f32 0.5, %v1701_v54  ;;  %487 = vmatmul.f32.gmra.mxu3 %v2098_v55  ;;  %v548_v15 = vmul.f32 %v2098_v55, %v2098_v55  ;;  %v2105_v60 = vadd.f32 %v356_v20, %v1977_v22 }
  0xd6   :  { %v1703_v17 = vpop.eup %1702  ;;  %1704 = vtanh.f32 %v245_v58  ;;  %v230_v53 = vmul.f32 0.5, %v145_v57 }
  0xd7   :  { %v340_v61 = vadd.f32 0.5, %v308_v59  ;;  %v293_v62 = vmul.f32 0.5, %v1703_v17  ;;  %598 = vadd.xlane.f32.xlu0 %v548_v15  ;;  %442 = vmatmul.f32.gmra.mxu1 %v2105_v60  ;;  %v533_v21 = vmul.f32 %v2105_v60, %v2105_v60 }
  0xd8   :  { %1706 = vtanh.f32 %v230_v53 }
  0xd9   :  { %v372_v0 = vmul.f32 %v340_v61, %v187_v1  ;;  %v325_v18 = vadd.f32 0.5, %v293_v62  ;;  %v192_v2 = vpop.f32.mrf.mxu2  ;;  %568 = vadd.xlane.f32.xlu1 %v533_v21 }
  0xda   :  { %v193_v5 = vadd.f32 %v2055_v49, %v192_v2 }
  0xdb   :  { %v357_v22 = vmul.f32 %v325_v18, %v142_v8  ;;  %v147_v7 = vpop.f32.mrf.mxu0  ;;  %v2112_v9 = vadd.f32 %v372_v0, %v1979_v23 }
  0xdc   :  { %v1705_v63 = vpop.eup %1704  ;;  %v246_v11 = vmul.f32 0.5, %v193_v5  ;;  %v148_v4 = vadd.f32 %v2055_v49, %v147_v7 }
  0xdd   :  { %v309_v12 = vmul.f32 0.5, %v1705_v63  ;;  %490 = vmatmul.f32.gmra.mxu3 %v2112_v9  ;;  %v2117_v13 = vadd.f32 %v357_v22, %v1983_v24  ;;  %v549_v8 = vmul.f32 %v2112_v9, %v2112_v9 }
  0xde   :  { %v1707_v1 = vpop.eup %1706  ;;  %1708 = vtanh.f32 %v246_v11  ;;  %v231_v19 = vmul.f32 0.5, %v148_v4 }
  0xdf   :  { %v341_v14 = vadd.f32 0.5, %v309_v12  ;;  %v294_v38 = vmul.f32 0.5, %v1707_v1  ;;  %445 = vmatmul.f32.gmra.mxu1 %v2117_v13  ;;  %v534_v23 = vmul.f32 %v2117_v13, %v2117_v13 }
  0xe0   :  { %1710 = vtanh.f32 %v231_v19 }
  0xe1   :  { %v373_v16 = vmul.f32 %v341_v14, %v190_v51  ;;  %v326_v20 = vadd.f32 0.5, %v294_v38  ;;  %v195_v52 = vpop.f32.mrf.mxu2  ;;  %570 = vadd.xlane.f32.xlu2 %v534_v23  ;;  %600 = vadd.xlane.f32.xlu1 %v549_v8 }
  0xe2   :  { %v196_v24 = vadd.f32 %v2055_v49, %v195_v52 }
  0xe3   :  { %v358_v54 = vmul.f32 %v326_v20, %v145_v57  ;;  %v150_v58 = vpop.f32.mrf.mxu0  ;;  %v2126_v59 = vadd.f32 %v373_v16, %v1985_v25 }
  0xe4   :  { %v1709_v15 = vpop.eup %1708  ;;  %v247_v17 = vmul.f32 0.5, %v196_v24  ;;  %v151_v53 = vadd.f32 %v2055_v49, %v150_v58 }
  0xe5   :  { %v310_v61 = vmul.f32 0.5, %v1709_v15  ;;  %493 = vmatmul.f32.gmra.mxu3 %v2126_v59  ;;  %v2131_v51 = vadd.f32 %v358_v54, %v1989_v26  ;;  %v550_v25 = vmul.f32 %v2126_v59, %v2126_v59 }
  0xe6   :  { %v1711_v62 = vpop.eup %1710  ;;  %1712 = vtanh.f32 %v247_v17  ;;  %v232_v21 = vmul.f32 0.5, %v151_v53 }
  0xe7   :  { %v342_v0 = vadd.f32 0.5, %v310_v61  ;;  %v295_v18 = vmul.f32 0.5, %v1711_v62  ;;  %448 = vmatmul.f32.gmra.mxu1 %v2131_v51 }
  0xe8   :  { %1714 = vtanh.f32 %v232_v21 }
  0xe9   :  { %v374_v57 = vmul.f32 %v342_v0, %v193_v5  ;;  %v327_v2 = vadd.f32 0.5, %v295_v18  ;;  %v198_v22 = vpop.f32.mrf.mxu2  ;;  %602 = vadd.xlane.f32.xlu2 %v550_v25 }
  0xea   :  { %v199_v7 = vadd.f32 %v2055_v49, %v198_v22 }
  0xeb   :  { %v359_v63 = vmul.f32 %v327_v2, %v148_v4  ;;  %v153_v26 = vpop.f32.mrf.mxu0  ;;  %v2138_v11 = vadd.f32 %v374_v57, %v1991_v27  ;;  %v535_v27 = vmul.f32 %v2131_v51, %v2131_v51 }
  0xec   :  { %v1713_v12 = vpop.eup %1712  ;;  %v248_v1 = vmul.f32 0.5, %v199_v7  ;;  %v154_v19 = vadd.f32 %v2055_v49, %v153_v26 }
  0xed   :  { %v311_v14 = vmul.f32 0.5, %v1713_v12  ;;  %496 = vmatmul.f32.gmra.mxu3 %v2138_v11  ;;  %v551_v5 = vmul.f32 %v2138_v11, %v2138_v11  ;;  %v2145_v38 = vadd.f32 %v359_v63, %v1995_v28 }
  0xee   :  { %v1715_v23 = vpop.eup %1714  ;;  %1716 = vtanh.f32 %v248_v1  ;;  %v233_v4 = vmul.f32 0.5, %v154_v19 }
  0xef   :  { %v343_v8 = vadd.f32 0.5, %v311_v14  ;;  %v296_v16 = vmul.f32 0.5, %v1715_v23  ;;  %604 = vadd.xlane.f32.xlu0 %v551_v5  ;;  %451 = vmatmul.f32.gmra.mxu1 %v2145_v38  ;;  %v536_v18 = vmul.f32 %v2145_v38, %v2145_v38 }
  0xf0   :  { %1718 = vtanh.f32 %v233_v4 }
  0xf1   :  { %v375_v20 = vmul.f32 %v343_v8, %v196_v24  ;;  %v328_v52 = vadd.f32 0.5, %v296_v16  ;;  %v201_v54 = vpop.f32.mrf.mxu2  ;;  %572 = vadd.xlane.f32.xlu2 %v535_v27 }
  0xf2   :  { %v202_v58 = vadd.f32 %v2055_v49, %v201_v54 }
  0xf3   :  { %v360_v28 = vmul.f32 %v328_v52, %v151_v53  ;;  %v156_v15 = vpop.f32.mrf.mxu0  ;;  %v2152_v17 = vadd.f32 %v375_v20, %v1997_v29 }
  0xf4   :  { %v1717_v61 = vpop.eup %1716  ;;  %v249_v62 = vmul.f32 0.5, %v202_v58  ;;  %v157_v21 = vadd.f32 %v2055_v49, %v156_v15 }
  0xf5   :  { %v312_v0 = vmul.f32 0.5, %v1717_v61  ;;  %499 = vmatmul.f32.gmra.mxu3 %v2152_v17  ;;  %v552_v24 = vmul.f32 %v2152_v17, %v2152_v17  ;;  %v2161_v25 = vadd.f32 %v360_v28, %v2001_v30 }
  0xf6   :  { %v1719_v53 = vpop.eup %1718  ;;  %1720 = vtanh.f32 %v249_v62  ;;  %v234_v29 = vmul.f32 0.5, %v157_v21 }
  0xf7   :  { %v344_v57 = vadd.f32 0.5, %v312_v0  ;;  %v297_v2 = vmul.f32 0.5, %v1719_v53  ;;  %606 = vadd.xlane.f32.xlu1 %v552_v24  ;;  %574 = vadd.xlane.f32.xlu0 %v536_v18 }
  0xf8   :  { %1722 = vtanh.f32 %v234_v29  ;;  %454 = vmatmul.f32.gmra.mxu1 %v2161_v25 }
  0xf9   :  { %v376_v22 = vmul.f32 %v344_v57, %v199_v7  ;;  %v329_v63 = vadd.f32 0.5, %v297_v2  ;;  %v204_v26 = vpop.f32.mrf.mxu2  ;;  %v537_v7 = vmul.f32 %v2161_v25, %v2161_v25 }
  0xfa   :  { %v205_v12 = vadd.f32 %v2055_v49, %v204_v26 }
  0xfb   :  { %v361_v1 = vmul.f32 %v329_v63, %v154_v19  ;;  %v159_v14 = vpop.f32.mrf.mxu0  ;;  %v2166_v30 = vadd.f32 %v376_v22, %v2003_v31 }
  0xfc   :  { %v1721_v5 = vpop.eup %1720  ;;  %v250_v23 = vmul.f32 0.5, %v205_v12  ;;  %v160_v4 = vadd.f32 %v2055_v49, %v159_v14 }
  0xfd   :  { %3009 = vst [vmem:[#allocation12_spill] sm:$0xff] %v2166_v30  ;;  %v313_v8 = vmul.f32 0.5, %v1721_v5  ;;  %502 = vmatmul.f32.gmra.mxu3 %v2166_v30  ;;  %v553_v16 = vmul.f32 %v2166_v30, %v2166_v30  ;;  %v2175_v27 = vadd.f32 %v361_v1, %v2007_v32 }
  0xfe   :  { %v1723_v19 = vpop.eup %1722  ;;  %1724 = vtanh.f32 %v250_v23  ;;  %v235_v31 = vmul.f32 0.5, %v160_v4 }
  0xff   :  { %3010 = vst [vmem:[#allocation13_spill] sm:$0xff] %v2175_v27  ;;  %v345_v20 = vadd.f32 0.5, %v313_v8  ;;  %v298_v52 = vmul.f32 0.5, %v1723_v19  ;;  %608 = vadd.xlane.f32.xlu2 %v553_v16  ;;  %576 = vadd.xlane.f32.xlu1 %v537_v7  ;;  %v538_v57 = vmul.f32 %v2175_v27, %v2175_v27 }
 0x100   :  { %1726 = vtanh.f32 %v235_v31  ;;  %457 = vmatmul.f32.gmra.mxu1 %v2175_v27 }
 0x101   :  { %v377_v54 = vmul.f32 %v345_v20, %v202_v58  ;;  %v330_v28 = vadd.f32 0.5, %v298_v52  ;;  %v207_v15 = vpop.f32.mrf.mxu2 }
 0x102   :  { %v208_v61 = vadd.f32 %v2055_v49, %v207_v15 }
 0x103   :  { %v362_v62 = vmul.f32 %v330_v28, %v157_v21  ;;  %v162_v0 = vpop.f32.mrf.mxu0  ;;  %v2180_v32 = vadd.f32 %v377_v54, %v2009_v33 }
 0x104   :  { %v1725_v24 = vpop.eup %1724  ;;  %v251_v18 = vmul.f32 0.5, %v208_v61  ;;  %v163_v53 = vadd.f32 %v2055_v49, %v162_v0 }
 0x105   :  { %3011 = vst [vmem:[#allocation14_spill] sm:$0xff] %v2180_v32  ;;  %v314_v29 = vmul.f32 0.5, %v1725_v24  ;;  %505 = vmatmul.f32.gmra.mxu3 %v2180_v32  ;;  %v554_v58 = vmul.f32 %v2180_v32, %v2180_v32  ;;  %v2189_v2 = vadd.f32 %v362_v62, %v2013_v34 }
 0x106   :  { %v1727_v21 = vpop.eup %1726  ;;  %1728 = vtanh.f32 %v251_v18  ;;  %v236_v33 = vmul.f32 0.5, %v163_v53 }
 0x107   :  { %v346_v22 = vadd.f32 0.5, %v314_v29  ;;  %v299_v63 = vmul.f32 0.5, %v1727_v21  ;;  %578 = vadd.xlane.f32.xlu2 %v538_v57  ;;  %610 = vadd.xlane.f32.xlu0 %v554_v58 }
 0x108   :  { %1730 = vtanh.f32 %v236_v33  ;;  %460 = vmatmul.f32.gmra.mxu1 %v2189_v2 }
 0x109   :  { %v378_v26 = vmul.f32 %v346_v22, %v205_v12  ;;  %v331_v1 = vadd.f32 0.5, %v299_v63  ;;  %v210_v14 = vpop.f32.mrf.mxu2  ;;  %v539_v12 = vmul.f32 %v2189_v2, %v2189_v2 }
 0x10a   :  { %v211_v5 = vadd.f32 %v2055_v49, %v210_v14 }
 0x10b   :  { %v363_v23 = vmul.f32 %v331_v1, %v160_v4  ;;  %v165_v8 = vpop.f32.mrf.mxu0  ;;  %v2194_v34 = vadd.f32 %v378_v26, %v2015_v35 }
 0x10c   :  { %v1729_v16 = vpop.eup %1728  ;;  %v252_v7 = vmul.f32 0.5, %v211_v5  ;;  %v166_v19 = vadd.f32 %v2055_v49, %v165_v8 }
 0x10d   :  { %3012 = vst [vmem:[#allocation15_spill] sm:$0xff] %v2194_v34  ;;  %v315_v31 = vmul.f32 0.5, %v1729_v16  ;;  %508 = vmatmul.f32.gmra.mxu3 %v2194_v34  ;;  %v555_v20 = vmul.f32 %v2194_v34, %v2194_v34  ;;  %v2203_v52 = vadd.f32 %v363_v23, %v2019_v36 }
 0x10e   :  { %v1731_v4 = vpop.eup %1730  ;;  %1732 = vtanh.f32 %v252_v7  ;;  %v237_v35 = vmul.f32 0.5, %v166_v19 }
 0x10f   :  { %3013 = vst [vmem:[#allocation16_spill] sm:$0xff] %v2203_v52  ;;  %v347_v54 = vadd.f32 0.5, %v315_v31  ;;  %v300_v28 = vmul.f32 0.5, %v1731_v4  ;;  %612 = vadd.xlane.f32.xlu1 %v555_v20  ;;  %580 = vadd.xlane.f32.xlu0 %v539_v12 }
 0x110   :  { %1734 = vtanh.f32 %v237_v35  ;;  %463 = vmatmul.f32.gmra.mxu1 %v2203_v52 }
 0x111   :  { %v379_v15 = vmul.f32 %v347_v54, %v208_v61  ;;  %v332_v62 = vadd.f32 0.5, %v300_v28  ;;  %v213_v0 = vpop.f32.mrf.mxu2  ;;  %v540_v61 = vmul.f32 %v2203_v52, %v2203_v52 }
 0x112   :  { %v214_v24 = vadd.f32 %v2055_v49, %v213_v0 }
 0x113   :  { %v364_v18 = vmul.f32 %v332_v62, %v163_v53  ;;  %v168_v29 = vpop.f32.mrf.mxu0  ;;  %v2208_v36 = vadd.f32 %v379_v15, %v2021_v37 }
 0x114   :  { %v1733_v57 = vpop.eup %1732  ;;  %v253_v58 = vmul.f32 0.5, %v214_v24  ;;  %v169_v21 = vadd.f32 %v2055_v49, %v168_v29 }
 0x115   :  { %3014 = vst [vmem:[#allocation17_spill] sm:$0xff] %v2208_v36  ;;  %v316_v33 = vmul.f32 0.5, %v1733_v57  ;;  %511 = vmatmul.f32.gmra.mxu3 %v2208_v36  ;;  %v556_v22 = vmul.f32 %v2208_v36, %v2208_v36  ;;  %v2217_v63 = vadd.f32 %v364_v18, %v2025_v39 }
 0x116   :  { %v1735_v53 = vpop.eup %1734  ;;  %1736 = vtanh.f32 %v253_v58  ;;  %v238_v37 = vmul.f32 0.5, %v169_v21 }
 0x117   :  { %3015 = vst [vmem:[#allocation18_spill] sm:$0xff] %v2217_v63  ;;  %v348_v26 = vadd.f32 0.5, %v316_v33  ;;  %v301_v1 = vmul.f32 0.5, %v1735_v53  ;;  %614 = vadd.xlane.f32.xlu2 %v556_v22  ;;  %582 = vadd.xlane.f32.xlu1 %v540_v61  ;;  %v541_v54 = vmul.f32 %v2217_v63, %v2217_v63 }
 0x118   :  { %1738 = vtanh.f32 %v238_v37  ;;  %466 = vmatmul.f32.gmra.mxu1 %v2217_v63 }
 0x119   :  { %v380_v14 = vmul.f32 %v348_v26, %v211_v5  ;;  %v333_v23 = vadd.f32 0.5, %v301_v1  ;;  %v216_v8 = vpop.f32.mrf.mxu2 }
 0x11a   :  { %v217_v16 = vadd.f32 %v2055_v49, %v216_v8 }
 0x11b   :  { %v365_v7 = vmul.f32 %v333_v23, %v166_v19  ;;  %v171_v31 = vpop.f32.mrf.mxu0  ;;  %v2222_v39 = vadd.f32 %v380_v14, %v2027_v40 }
 0x11c   :  { %v1737_v20 = vpop.eup %1736  ;;  %v254_v12 = vmul.f32 0.5, %v217_v16  ;;  %v172_v4 = vadd.f32 %v2055_v49, %v171_v31 }
 0x11d   :  { %3016 = vst [vmem:[#allocation19_spill] sm:$0xff] %v2222_v39  ;;  %v317_v35 = vmul.f32 0.5, %v1737_v20  ;;  %514 = vmatmul.f32.gmra.mxu3 %v2222_v39  ;;  %v557_v5 = vmul.f32 %v2222_v39, %v2222_v39  ;;  %v2231_v28 = vadd.f32 %v365_v7, %v2031_v41 }
 0x11e   :  { %v1739_v19 = vpop.eup %1738  ;;  %1740 = vtanh.f32 %v254_v12  ;;  %v239_v40 = vmul.f32 0.5, %v172_v4 }
 0x11f   :  { %3017 = vst [vmem:[#allocation20_spill] sm:$0xff] %v2231_v28  ;;  %v349_v15 = vadd.f32 0.5, %v317_v35  ;;  %v302_v62 = vmul.f32 0.5, %v1739_v19  ;;  %584 = vadd.xlane.f32.xlu2 %v541_v54  ;;  %616 = vadd.xlane.f32.xlu0 %v557_v5 }
 0x120   :  { %1742 = vtanh.f32 %v239_v40  ;;  %469 = vmatmul.f32.gmra.mxu1 %v2231_v28 }
 0x121   :  { %v381_v0 = vmul.f32 %v349_v15, %v214_v24  ;;  %v334_v18 = vadd.f32 0.5, %v302_v62  ;;  %v219_v29 = vpop.f32.mrf.mxu2  ;;  %v542_v24 = vmul.f32 %v2231_v28, %v2231_v28 }
 0x122   :  { %v220_v57 = vadd.f32 %v2055_v49, %v219_v29 }
 0x123   :  { %v366_v58 = vmul.f32 %v334_v18, %v169_v21  ;;  %v174_v33 = vpop.f32.mrf.mxu0  ;;  %v2236_v41 = vadd.f32 %v381_v0, %v2033_v42 }
 0x124   :  { %v1741_v22 = vpop.eup %1740  ;;  %v255_v61 = vmul.f32 0.5, %v220_v57  ;;  %v175_v53 = vadd.f32 %v2055_v49, %v174_v33 }
 0x125   :  { %3018 = vst [vmem:[#allocation21_spill] sm:$0xff] %v2236_v41  ;;  %v318_v37 = vmul.f32 0.5, %v1741_v22  ;;  %517 = vmatmul.f32.gmra.mxu3 %v2236_v41  ;;  %v558_v26 = vmul.f32 %v2236_v41, %v2236_v41  ;;  %v2245_v1 = vadd.f32 %v366_v58, %v2037_v43 }
 0x126   :  { %v1743_v21 = vpop.eup %1742  ;;  %1744 = vtanh.f32 %v255_v61  ;;  %v240_v42 = vmul.f32 0.5, %v175_v53 }
 0x127   :  { %3019 = vst [vmem:[#allocation22_spill] sm:$0xff] %v2245_v1  ;;  %v350_v14 = vadd.f32 0.5, %v318_v37  ;;  %v303_v23 = vmul.f32 0.5, %v1743_v21  ;;  %618 = vadd.xlane.f32.xlu1 %v558_v26  ;;  %586 = vadd.xlane.f32.xlu0 %v542_v24  ;;  %v543_v40 = vmul.f32 %v2245_v1, %v2245_v1 }
 0x128   :  { %1746 = vtanh.f32 %v240_v42  ;;  %472 = vmatmul.f32.gmra.mxu1 %v2245_v1 }
 0x129   :  { %v382_v8 = vmul.f32 %v350_v14, %v217_v16  ;;  %v335_v7 = vadd.f32 0.5, %v303_v23  ;;  %v222_v31 = vpop.f32.mrf.mxu2 }
 0x12a   :  { %v223_v20 = vadd.f32 %v2055_v49, %v222_v31 }
 0x12b   :  { %v367_v12 = vmul.f32 %v335_v7, %v172_v4  ;;  %v2250_v35 = vadd.f32 %v382_v8, %v2039_v44  ;;  %v1922_v44 = vmov 0  }
 0x12c   :  { %v1745_v43 = vpop.eup %1744  ;;  %v256_v54 = vmul.f32 0.5, %v223_v20  ;;  %1680 = vset.pattern.permute.xlu2 %v1922_v44  ;;  %1681 = vset.pattern.permute.xlu0 %v1922_v44 }
 0x12d   :  { %3020 = vst [vmem:[#allocation23_spill] sm:$0xff] %v2250_v35  ;;  %v319_v5 = vmul.f32 0.5, %v1745_v43  ;;  %520 = vmatmul.f32.gmra.mxu3 %v2250_v35  ;;  %v559_v19 = vmul.f32 %v2250_v35, %v2250_v35  ;;  %v2258_v16 = vadd.f32 %v367_v12, %v2043_v45  ;;  %1682 = vset.pattern.permute.xlu1 %v1922_v44 }
 0x12e   :  { %v1747_v15 = vpop.eup %1746  ;;  %1748 = vtanh.f32 %v256_v54 }
 0x12f   :  { %3021 = vst [vmem:[#allocation24_spill] sm:$0xff] %v2258_v16  ;;  %v351_v49 = vadd.f32 0.5, %v319_v5  ;;  %v304_v4 = vmul.f32 0.5, %v1747_v15  ;;  %620 = vadd.xlane.f32.xlu2 %v559_v19  ;;  %588 = vadd.xlane.f32.xlu1 %v543_v40  ;;  %v544_v33 = vmul.f32 %v2258_v16, %v2258_v16 }
 0x130   :  { %475 = vmatmul.f32.gmra.mxu1 %v2258_v16 }
 0x131   :  { %v383_v62 = vmul.f32 %v351_v49, %v220_v57  ;;  %v336_v0 = vadd.f32 0.5, %v304_v4 }
 0x133   :  { %v368_v18 = vmul.f32 %v336_v0, %v175_v53  ;;  %v2262_v29 = vadd.f32 %v383_v62, %v2045_v46 }
 0x134   :  { %v1749_v45 = vpop.eup %1748  ;;  %v563_v53 = vpop.xlane.xlu0 %562 }
 0x135   :  { %3022 = vst [vmem:[#allocation25_spill] sm:$0xff] %v2262_v29  ;;  %v320_v58 = vmul.f32 0.5, %v1749_v45  ;;  %523 = vmatmul.f32.gmra.mxu3 %v2262_v29  ;;  %v560_v22 = vmul.f32 %v2262_v29, %v2262_v29  ;;  %v2270_v61 = vadd.f32 %v368_v18, %v2049_v47  ;;  %v658_v42 = vmul.f32 0.0078125, %v563_v53 }
 0x137   :  { %3023 = vst [vmem:[#allocation26_spill] sm:$0xff] %v2270_v61  ;;  %v352_v57 = vadd.f32 0.5, %v320_v58  ;;  %590 = vadd.xlane.f32.xlu2 %v544_v33  ;;  %622 = vadd.xlane.f32.xlu0 %v560_v22  ;;  %v545_v26 = vmul.f32 %v2270_v61, %v2270_v61 }
 0x138   :  { %478 = vmatmul.f32.gmra.mxu1 %v2270_v61 }
 0x139   :  { %v384_v46 = vmul.f32 %v352_v57, %v223_v20 }
 0x13a   :  { %v595_v8 = vpop.xlane.xlu1 %594 }
 0x13b   :  { %v2274_v37 = vadd.f32 %v384_v46, %v2051_v48  ;;  %v674_v49 = vmul.f32 0.0078125, %v595_v8 }
 0x13c   :  { %v434_v24 = vpop.f32.mrf.mxu1  ;;  %v565_v31 = vpop.xlane.xlu0 %564 }
 0x13d   :  { %3024 = vst [vmem:[#allocation27_spill] sm:$0xff] %v2274_v37  ;;  %v626_v21 = vmul.f32 0.0078125, %v434_v24  ;;  %526 = vmatmul.f32.gmra.mxu3 %v2274_v37  ;;  %v561_v47 = vmul.f32 %v2274_v37, %v2274_v37  ;;  %v659_v43 = vmul.f32 0.0078125, %v565_v31 }
 0x13f   :  { %v690_v14 = vmul.f32 %v626_v21, %v626_v21  ;;  %624 = vadd.xlane.f32.xlu1 %v561_v47  ;;  %592 = vadd.xlane.f32.xlu0 %v545_v26 }
 0x141   :  { %v722_v23 = vsub.f32 %v658_v42, %v690_v14 }
 0x142   :  { %v597_v18 = vpop.xlane.xlu2 %596 }
 0x143   :  { %v754_v7 = vmax.f32 %v722_v23, 0.0  ;;  %v675_v8 = vmul.f32 0.0078125, %v597_v18 }
 0x144   :  { %v437_v48 = vpop.f32.mrf.mxu1  ;;  %v567_v15 = vpop.xlane.xlu1 %566 }
 0x145   :  { %v2281_v20 = vadd.f32 1e-05, %v754_v7  ;;  %v627_v12 = vmul.f32 0.0078125, %v437_v48  ;;  %v660_v57 = vmul.f32 0.0078125, %v567_v15 }
 0x147   :  { %1750 = vrsqrt.f32 %v2281_v20  ;;  %v691_v54 = vmul.f32 %v627_v12, %v627_v12  ;;  %vm1016_vm1 = vweird.f32 %v2281_v20 }
 0x148   :  { %v482_v5 = vpop.f32.mrf.mxu3 }
 0x149   :  { %v723_v19 = vsub.f32 %v659_v43, %v691_v54  ;;  %v642_v40 = vmul.f32 0.0078125, %v482_v5 }
 0x14b   :  { %v755_v4 = vmax.f32 %v723_v19, 0.0  ;;  %v706_v44 = vmul.f32 %v642_v40, %v642_v40 }
 0x14c   :  { %v440_v62 = vpop.f32.mrf.mxu1  ;;  %v569_v31 = vpop.xlane.xlu1 %568 }
 0x14d   :  { %v2284_v0 = vpop.eup %1750  ;;  %v2286_v45 = vadd.f32 1e-05, %v755_v4  ;;  %v738_v58 = vsub.f32 %v674_v49, %v706_v44  ;;  %v628_v33 = vmul.f32 0.0078125, %v440_v62  ;;  %v599_v4 = vpop.xlane.xlu0 %598 }
 0x14e   :  { %v1011_v22 = vmul.f32 %v2284_v0, %v2281_v20  ;;  %vm1017_vm0 = vweird.f32 %v2284_v0 }
 0x14f   :  { %1752 = vrsqrt.f32 %v2286_v45  ;;  %v692_v46 = vmul.f32 %v628_v33, %v628_v33  ;;  %788 = vperm.xlu2 %1680, %v626_v21   ;;  %v770_v53 = vmax.f32 %v738_v58, 0.0  ;;  %vm1018_vm2 = vmor %vm1016_vm1, %vm1017_vm0  ;;  %vm1026_vm4 = vweird.f32 %v2286_v45 }
 0x150   :  { %v485_v26 = vpop.f32.mrf.mxu3  ;;  %v1012_v42 = vmul.f32 %v2284_v0, %v1011_v22 }
 0x151   :  { %v724_v24 = vsub.f32 %v660_v57, %v692_v46  ;;  %v643_v47 = vmul.f32 0.0078125, %v485_v26  ;;  %v2292_v7 = vadd.f32 1e-05, %v770_v53  ;;  %v676_v46 = vmul.f32 0.0078125, %v599_v4 }
 0x152   :  { %v1013_v15 = vmul.f32 0.5, %v1012_v42 }
 0x153   :  { %v756_v14 = vmax.f32 %v724_v24, 0.0  ;;  %v707_v23 = vmul.f32 %v643_v47, %v643_v47  ;;  %793 = vperm.xlu0 %1681, %v627_v12   ;;  %1754 = vrsqrt.f32 %v2292_v7  ;;  %v661_v12 = vmul.f32 0.0078125, %v569_v31 }
 0x154   :  { %v571_v43 = vpop.xlane.xlu2 %570  ;;  %v443_v54 = vpop.f32.mrf.mxu1  ;;  %v1014_v57 = vsub.f32 1.5, %v1013_v15  ;;  %vm1176_vm5 = vweird.f32 %v2292_v7 }
 0x155   :  { %v2294_v48 = vpop.eup %1752  ;;  %v2296_v5 = vadd.f32 1e-05, %v756_v14  ;;  %v739_v21 = vsub.f32 %v675_v8, %v707_v23  ;;  %v629_v19 = vmul.f32 0.0078125, %v443_v54 }
 0x156   :  { %v1021_v49 = vmul.f32 %v2294_v48, %v2286_v45  ;;  %v1015_v54 = vmul.f32 %v2284_v0, %v1014_v57  ;;  %v601_v57 = vpop.xlane.xlu1 %600  ;;  %vm1027_vm3 = vweird.f32 %v2294_v48 }
 0x157   :  { %v693_v44 = vmul.f32 %v629_v19, %v629_v19  ;;  %803 = vperm.xlu2 %1680, %v629_v19   ;;  %1756 = vrsqrt.f32 %v2296_v5  ;;  %v771_v58 = vmax.f32 %v739_v21, 0.0  ;;  %vm2350_vm7 = vmor %vm1026_vm4, %vm1027_vm3  ;;  %vm1036_vm13 = vweird.f32 %v2296_v5 }
 0x158   :  { %v488_v62 = vpop.f32.mrf.mxu3  ;;  %868 = vperm.xlu1 %1682, %v642_v40   ;;  %v1022_v24 = vmul.f32 %v2294_v48, %v1021_v49 }
 0x159   :  { %v644_v18 = vmul.f32 0.0078125, %v488_v62  ;;  %v725_v22 = vsub.f32 %v661_v12, %v693_v44  ;;  %v2304_v23 = vpop.eup %1754  ;;  %v2306_v8 = vadd.f32 1e-05, %v771_v58  ;;  %v1019_v62 = vsel %vm1018_vm2, %v2284_v0, %v1015_v54 }
 0x15a   :  { %v1023_v49 = vmul.f32 0.5, %v1022_v24  ;;  %v1171_v4 = vmul.f32 %v2304_v23, %v2292_v7  ;;  %vm1177_vm6 = vweird.f32 %v2304_v23 }
 0x15b   :  { %v708_v53 = vmul.f32 %v644_v18, %v644_v18  ;;  %873 = vperm.xlu0 %1681, %v643_v47   ;;  %v757_v26 = vmax.f32 %v725_v22, 0.0  ;;  %vm2386_vm12 = vmor %vm1176_vm5, %vm1177_vm6  ;;  %vm1186_vm3 = vweird.f32 %v2306_v8 }
 0x15c   :  { %v446_v14 = vpop.f32.mrf.mxu1  ;;  %v2311_v19 = vpop.xlane.xlu2 %602  ;;  %v1024_v22 = vsub.f32 1.5, %v1023_v49 }
 0x15d   :  { %v740_v42 = vsub.f32 %v676_v46, %v708_v53  ;;  %v2308_v40 = vadd.f32 1e-05, %v757_v26  ;;  %v630_v31 = vmul.f32 0.0078125, %v446_v14  ;;  %v2313_v47 = vpop.eup %1756  ;;  %v1172_v26 = vmul.f32 %v2304_v23, %v1171_v4 }
 0x15e   :  { %v1025_v49 = vmul.f32 %v2294_v48, %v1024_v22  ;;  %vm1037_vm8 = vweird.f32 %v2313_v47 }
 0x15f   :  { %v772_v21 = vmax.f32 %v740_v42, 0.0  ;;  %1758 = vrsqrt.f32 %v2308_v40  ;;  %878 = vperm.xlu2 %1680, %v644_v18   ;;  %v694_v44 = vmul.f32 %v630_v31, %v630_v31  ;;  %v1031_v18 = vmul.f32 %v2313_v47, %v2296_v5  ;;  %vm1038_vm15 = vmor %vm1036_vm13, %vm1037_vm8 }
 0x160   :  { %v491_v15 = vpop.f32.mrf.mxu3  ;;  %798 = vperm.xlu1 %1682, %v628_v33   ;;  %1760 = vrsqrt.f32 %v2306_v8  ;;  %v662_v33 = vmul.f32 0.0078125, %v571_v43  ;;  %v1173_v35 = vmul.f32 0.5, %v1172_v26  ;;  %vm1046_vm10 = vweird.f32 %v2308_v40 }
 0x161   :  { %v2319_v12 = vadd.f32 1e-05, %v772_v21  ;;  %v645_v20 = vmul.f32 0.0078125, %v491_v15  ;;  %v1032_v43 = vmul.f32 %v2313_v47, %v1031_v18  ;;  %v677_v21 = vmul.f32 0.0078125, %v601_v57 }
 0x162   :  { %v605_v58 = vpop.xlane.xlu0 %604  ;;  %v726_v46 = vsub.f32 %v662_v33, %v694_v44 }
 0x163   :  { %1762 = vrsqrt.f32 %v2319_v12  ;;  %1332 = vperm.xlu0 %1681, %v1019_v62   ;;  %v709_v14 = vmul.f32 %v645_v20, %v645_v20  ;;  %v1033_v22 = vmul.f32 0.5, %v1032_v43  ;;  %v1029_v43 = vsel %vm2350_vm7, %v2294_v48, %v1025_v49 }
 0x164   :  { %v449_v53 = vpop.f32.mrf.mxu1  ;;  %v758_v44 = vmax.f32 %v726_v46, 0.0  ;;  %v573_v62 = vpop.xlane.xlu2 %572  ;;  %v679_v61 = vmul.f32 0.0078125, %v605_v58  ;;  %vm1196_vm0 = vweird.f32 %v2319_v12 }
 0x165   :  { %v2329_v24 = vpop.eup %1758  ;;  %v631_v42 = vmul.f32 0.0078125, %v449_v53  ;;  %v663_v57 = vmul.f32 0.0078125, %v573_v62 }
 0x166   :  { %v1041_v0 = vmul.f32 %v2329_v24, %v2308_v40  ;;  %v2334_v54 = vpop.eup %1760  ;;  %vm1047_vm9 = vweird.f32 %v2329_v24 }
 0x167   :  { %808 = vperm.xlu2 %1680, %v630_v31   ;;  %v695_v37 = vmul.f32 %v631_v42, %v631_v42  ;;  %v1181_v31 = vmul.f32 %v2334_v54, %v2306_v8  ;;  %vm1048_vm11 = vmor %vm1046_vm10, %vm1047_vm9  ;;  %vm1187_vm2 = vweird.f32 %v2334_v54 }
 0x168   :  { %v494_v15 = vpop.f32.mrf.mxu3  ;;  %883 = vperm.xlu1 %1682, %v645_v20   ;;  %v1042_v53 = vmul.f32 %v2329_v24, %v1041_v0  ;;  %v741_v20 = vsub.f32 %v677_v21, %v709_v14  ;;  %v2356_v0 = vadd.f32 1e-05, %v758_v44  ;;  %vm1188_vm4 = vmor %vm1186_vm3, %vm1187_vm2 }
 0x169   :  { %v2338_v4 = vpop.eup %1762  ;;  %v646_v33 = vmul.f32 0.0078125, %v494_v15  ;;  %v1174_v15 = vsub.f32 1.5, %v1173_v35  ;;  %v727_v62 = vsub.f32 %v663_v57, %v695_v37  ;;  %v1182_v44 = vmul.f32 %v2334_v54, %v1181_v31 }
 0x16a   :  { %v1191_v18 = vmul.f32 %v2338_v4, %v2319_v12  ;;  %v1043_v26 = vmul.f32 0.5, %v1042_v53  ;;  %v575_v14 = vpop.xlane.xlu0 %574  ;;  %v773_v41 = vmax.f32 %v741_v20, 0.0  ;;  %1764 = vrsqrt.f32 %v2356_v0 }
 0x16b   :  { %888 = vperm.xlu0 %1681, %v646_v33   ;;  %v664_v1 = vmul.f32 0.0078125, %v575_v14  ;;  %v710_v37 = vmul.f32 %v646_v33, %v646_v33  ;;  %v1175_v40 = vmul.f32 %v2304_v23, %v1174_v15  ;;  %v759_v58 = vmax.f32 %v727_v62, 0.0 }
 0x16c   :  { %v1192_v45 = vmul.f32 %v2338_v4, %v1191_v18  ;;  %v452_v21 = vpop.f32.mrf.mxu1  ;;  %v1044_v29 = vsub.f32 1.5, %v1043_v26  ;;  %v1034_v18 = vsub.f32 1.5, %v1033_v22  ;;  %v2376_v57 = vadd.f32 1e-05, %v773_v41 }
 0x16d   :  { %v2362_v16 = vmul.f32 0.0078125, %v452_v21  ;;  %v1183_v33 = vmul.f32 0.5, %v1182_v44  ;;  %v678_v26 = vmul.f32 0.0078125, %v2311_v19  ;;  %v1179_v14 = vsel %vm2386_vm12, %v2304_v23, %v1175_v40 }
 0x16e   :  { %v1193_v53 = vmul.f32 0.5, %v1192_v45  ;;  %v1045_v35 = vmul.f32 %v2329_v24, %v1044_v29  ;;  %vm1197_vm14 = vweird.f32 %v2338_v4  ;;  %v2395_v19 = vadd.f32 1e-05, %v759_v58 }
 0x16f   :  { %v696_v46 = vmul.f32 %v2362_v16, %v2362_v16  ;;  %1337 = vperm.xlu2 %1680, %v1029_v43   ;;  %v742_v21 = vsub.f32 %v678_v26, %v710_v37  ;;  %v607_v43 = vpop.xlane.xlu1 %606  ;;  %1766 = vrsqrt.f32 %v2376_v57  ;;  %v1184_v62 = vsub.f32 1.5, %v1183_v33  ;;  %vm1198_vm1 = vmor %vm1196_vm0, %vm1197_vm14 }
 0x170   :  { %v497_v48 = vpop.f32.mrf.mxu3  ;;  %813 = vperm.xlu1 %1682, %v631_v42   ;;  %v1049_v20 = vsel %vm1048_vm11, %v2329_v24, %v1045_v35  ;;  %v1194_v22 = vsub.f32 1.5, %v1193_v53  ;;  %v1035_v42 = vmul.f32 %v2313_v47, %v1034_v18  ;;  %v2402_v7 = vpop.eup %1764  ;;  %vm1056_vm6 = vweird.f32 %v2356_v0 }
 0x171   :  { %v2370_v49 = vmul.f32 0.0078125, %v497_v48  ;;  %v728_v31 = vsub.f32 %v664_v1, %v696_v46  ;;  %v774_v44 = vmax.f32 %v742_v21, 0.0  ;;  %v1185_v35 = vmul.f32 %v2334_v54, %v1184_v62 }
 0x172   :  { %v1039_v5 = vsel %vm1038_vm15, %v2313_v47, %v1035_v42  ;;  %v1051_v47 = vmul.f32 %v2402_v7, %v2356_v0  ;;  %vm1057_vm5 = vweird.f32 %v2402_v7  ;;  %vm1206_vm13 = vweird.f32 %v2376_v57 }
 0x173   :  { %v711_v29 = vmul.f32 %v2370_v49, %v2370_v49  ;;  %1347 = vperm.xlu0 %1681, %v1049_v20   ;;  %v760_v45 = vmax.f32 %v728_v31, 0.0  ;;  %v2428_v31 = vpop.xlane.xlu2 %608  ;;  %vm1058_vm7 = vmor %vm1056_vm6, %vm1057_vm5  ;;  %vm1066_vm15 = vweird.f32 %v2395_v19 }
 0x175   :  { %v743_v41 = vsub.f32 %v679_v61, %v711_v29  ;;  %v455_v24 = vpop.f32.mrf.mxu1  ;;  %v2397_v15 = vadd.f32 1e-05, %v760_v45  ;;  %v1195_v61 = vmul.f32 %v2338_v4, %v1194_v22  ;;  %v2420_v12 = vpop.eup %1766  ;;  %v1189_v22 = vsel %vm1188_vm4, %v2334_v54, %v1185_v35 }
 0x176   :  { %v633_v37 = vmul.f32 0.0078125, %v455_v24  ;;  %v1052_v29 = vmul.f32 %v2402_v7, %v1051_v47  ;;  %v1201_v33 = vmul.f32 %v2420_v12, %v2376_v57  ;;  %vm1207_vm10 = vweird.f32 %v2420_v12 }
 0x177   :  { %v775_v23 = vmax.f32 %v743_v41, 0.0  ;;  %1768 = vrsqrt.f32 %v2397_v15  ;;  %1412 = vperm.xlu2 %1680, %v1179_v14   ;;  %v1199_v46 = vsel %vm1198_vm1, %v2338_v4, %v1195_v61  ;;  %v2426_v4 = vadd.f32 1e-05, %v774_v44  ;;  %v577_v8 = vpop.xlane.xlu1 %576  ;;  %vm1208_vm14 = vmor %vm1206_vm13, %vm1207_vm10 }
 0x178   :  { %v500_v53 = vpop.f32.mrf.mxu3  ;;  %1342 = vperm.xlu1 %1682, %v1039_v5   ;;  %1770 = vrsqrt.f32 %v2395_v19  ;;  %v697_v45 = vmul.f32 %v633_v37, %v633_v37  ;;  %v665_v14 = vmul.f32 0.0078125, %v577_v8  ;;  %v1053_v21 = vmul.f32 0.5, %v1052_v29 }
 0x179   :  { %v2408_v18 = vadd.f32 1e-05, %v775_v23  ;;  %v1202_v61 = vmul.f32 %v2420_v12, %v1201_v33  ;;  %vm1076_vm9 = vweird.f32 %v2397_v15  ;;  %vm1216_vm5 = vweird.f32 %v2426_v4 }
 0x17a   :  { %v2416_v48 = vpop.xlane.xlu0 %610  ;;  %v729_v23 = vsub.f32 %v665_v14, %v697_v45  ;;  %v1054_v35 = vsub.f32 1.5, %v1053_v21 }
 0x17b   :  { %1422 = vperm.xlu0 %1681, %v1199_v46   ;;  %1772 = vrsqrt.f32 %v2408_v18  ;;  %v579_v8 = vpop.xlane.xlu2 %578  ;;  %v1203_v45 = vmul.f32 0.5, %v1202_v61  ;;  %vm1226_vm2 = vweird.f32 %v2408_v18 }
 0x17c   :  { %1774 = vrsqrt.f32 %v2426_v4  ;;  %v761_v14 = vmax.f32 %v729_v23, 0.0  ;;  %v1055_v63 = vmul.f32 %v2402_v7, %v1054_v35 }
 0x17d   :  { %v458_v40 = vpop.f32.mrf.mxu1  ;;  %v2424_v58 = vpop.eup %1768 }
 0x17e   :  { %v1071_v20 = vmul.f32 %v2424_v58, %v2397_v15  ;;  %v2434_v42 = vpop.eup %1770  ;;  %v634_v1 = vmul.f32 0.0078125, %v458_v40  ;;  %v2464_v61 = vadd.f32 1e-05, %v761_v14  ;;  %vm1077_vm8 = vweird.f32 %v2424_v58 }
 0x17f   :  { %818 = vperm.xlu2 %1680, %v2362_v16   ;;  %v1061_v54 = vmul.f32 %v2434_v42, %v2395_v19  ;;  %v648_v16 = vmul.f32 0.0078125, %v500_v53  ;;  %v1059_v0 = vsel %vm1058_vm7, %v2402_v7, %v1055_v63  ;;  %vm1078_vm11 = vmor %vm1076_vm9, %vm1077_vm8  ;;  %vm1067_vm12 = vweird.f32 %v2434_v42 }
 0x180   :  { %v503_v26 = vpop.f32.mrf.mxu3  ;;  %1417 = vperm.xlu1 %1682, %v1189_v22   ;;  %v1072_v41 = vmul.f32 %v2424_v58, %v1071_v20  ;;  %v680_v22 = vmul.f32 0.0078125, %v607_v43  ;;  %v698_v21 = vmul.f32 %v634_v1, %v634_v1  ;;  %1776 = vrsqrt.f32 %v2464_v61  ;;  %vm1068_vm0 = vmor %vm1066_vm15, %vm1067_vm12 }
 0x181   :  { %v2441_v24 = vpop.eup %1772  ;;  %v1062_v40 = vmul.f32 %v2434_v42, %v1061_v54  ;;  %v649_v36 = vmul.f32 0.0078125, %v503_v26  ;;  %v1204_v26 = vsub.f32 1.5, %v1203_v45  ;;  %vm1086_vm8 = vweird.f32 %v2464_v61 }
 0x182   :  { %v581_v5 = vpop.xlane.xlu0 %580  ;;  %v1221_v44 = vmul.f32 %v2441_v24, %v2408_v18  ;;  %v1073_v47 = vmul.f32 0.5, %v1072_v41  ;;  %v2451_v20 = vpop.eup %1774  ;;  %vm1227_vm1 = vweird.f32 %v2441_v24 }
 0x183   :  { %828 = vperm.xlu0 %1681, %v634_v1   ;;  %v667_v29 = vmul.f32 0.0078125, %v581_v5  ;;  %v1211_v5 = vmul.f32 %v2451_v20, %v2426_v4  ;;  %v713_v7 = vmul.f32 %v649_v36, %v649_v36  ;;  %vm1228_vm3 = vmor %vm1226_vm2, %vm1227_vm1  ;;  %vm1217_vm4 = vweird.f32 %v2451_v20 }
 0x184   :  { %v1074_v39 = vsub.f32 1.5, %v1073_v47  ;;  %v1222_v43 = vmul.f32 %v2441_v24, %v1221_v44  ;;  %vm1218_vm6 = vmor %vm1216_vm5, %vm1217_vm4 }
 0x185   :  { %v461_v62 = vpop.f32.mrf.mxu1 }
 0x186   :  { %v2448_v46 = vmul.f32 0.0078125, %v461_v62  ;;  %v712_v62 = vmul.f32 %v648_v16, %v648_v16  ;;  %v1075_v35 = vmul.f32 %v2424_v58, %v1074_v39  ;;  %v2504_v57 = vpop.eup %1776 }
 0x187   :  { %893 = vperm.xlu2 %1680, %v2370_v49   ;;  %v1063_v49 = vmul.f32 0.5, %v1062_v40  ;;  %v1223_v40 = vmul.f32 0.5, %v1222_v43  ;;  %v681_v43 = vmul.f32 0.0078125, %v2428_v31  ;;  %vm1087_vm7 = vweird.f32 %v2504_v57 }
 0x188   :  { %v699_v33 = vmul.f32 %v2448_v46, %v2448_v46  ;;  %v506_v53 = vpop.f32.mrf.mxu3  ;;  %823 = vperm.xlu1 %1682, %v633_v37   ;;  %v666_v37 = vmul.f32 0.0078125, %v579_v8  ;;  %v744_v1 = vsub.f32 %v680_v22, %v712_v62  ;;  %v682_v8 = vmul.f32 0.0078125, %v2416_v48  ;;  %vm1088_vm9 = vmor %vm1086_vm8, %vm1087_vm7 }
 0x189   :  { %v2456_v41 = vmul.f32 0.0078125, %v506_v53  ;;  %v1212_v22 = vmul.f32 %v2451_v20, %v1211_v5  ;;  %v1079_v62 = vsel %vm1078_vm11, %v2424_v58, %v1075_v35 }
 0x18a   :  { %v731_v54 = vsub.f32 %v667_v29, %v699_v33  ;;  %v730_v29 = vsub.f32 %v666_v37, %v698_v21  ;;  %v1064_v33 = vsub.f32 1.5, %v1063_v49  ;;  %v2475_v53 = vpop.xlane.xlu2 %614  ;;  %v776_v39 = vmax.f32 %v744_v1, 0.0 }
 0x18b   :  { %903 = vperm.xlu0 %1681, %v649_v36   ;;  %v714_v44 = vmul.f32 %v2456_v41, %v2456_v41  ;;  %v1224_v21 = vsub.f32 1.5, %v1223_v40  ;;  %v745_v37 = vsub.f32 %v681_v43, %v713_v7 }
 0x18c   :  { %v763_v23 = vmax.f32 %v731_v54, 0.0  ;;  %v762_v63 = vmax.f32 %v730_v29, 0.0  ;;  %v1065_v15 = vmul.f32 %v2434_v42, %v1064_v33  ;;  %v1213_v54 = vmul.f32 0.5, %v1212_v22 }
 0x18d   :  { %v2468_v47 = vpop.f32.mrf.mxu1  ;;  %v746_v48 = vsub.f32 %v682_v8, %v714_v44  ;;  %v2492_v5 = vadd.f32 1e-05, %v776_v39  ;;  %v1225_v31 = vmul.f32 %v2441_v24, %v1224_v21  ;;  %v777_v40 = vmax.f32 %v745_v37, 0.0 }
 0x18e   :  { %v2482_v14 = vadd.f32 1e-05, %v763_v23  ;;  %v2498_v58 = vadd.f32 1e-05, %v762_v63  ;;  %v1069_v23 = vsel %vm1068_vm0, %v2434_v42, %v1065_v15  ;;  %v1214_v44 = vsub.f32 1.5, %v1213_v54 }
 0x18f   :  { %1352 = vperm.xlu2 %1680, %v1059_v0   ;;  %v778_v36 = vmax.f32 %v746_v48, 0.0  ;;  %v1081_v0 = vmul.f32 %v2504_v57, %v2464_v61  ;;  %v636_v33 = vmul.f32 0.0078125, %v2468_v47  ;;  %v2527_v39 = vadd.f32 1e-05, %v777_v40 }
 0x190   :  { %v2477_v45 = vpop.f32.mrf.mxu3  ;;  %898 = vperm.xlu1 %1682, %v648_v16   ;;  %v1205_v16 = vmul.f32 %v2420_v12, %v1204_v26  ;;  %1778 = vrsqrt.f32 %v2482_v14  ;;  %v2500_v26 = vpop.xlane.xlu1 %612  ;;  %v1215_v18 = vmul.f32 %v2451_v20, %v1214_v44  ;;  %vm1106_vm11 = vweird.f32 %v2482_v14 }
 0x191   :  { %1780 = vrsqrt.f32 %v2492_v5  ;;  %v2510_v19 = vadd.f32 1e-05, %v778_v36  ;;  %v1082_v7 = vmul.f32 %v2504_v57, %v1081_v0  ;;  %v700_v4 = vmul.f32 %v636_v33, %v636_v33 }
 0x192   :  { %v1209_v1 = vsel %vm1208_vm14, %v2420_v12, %v1205_v16  ;;  %v2512_v35 = vpop.xlane.xlu0 %616  ;;  %1782 = vrsqrt.f32 %v2498_v58  ;;  %v2515_v8 = vpop.xlane.xlu2 %584  ;;  %v1229_v12 = vsel %vm1228_vm3, %v2441_v24, %v1225_v31  ;;  %v1219_v63 = vsel %vm1218_vm6, %v2451_v20, %v1215_v18 }
 0x193   :  { %1362 = vperm.xlu0 %1681, %v1079_v62   ;;  %1784 = vrsqrt.f32 %v2510_v19  ;;  %vm1236_vm15 = vweird.f32 %v2492_v5  ;;  %vm1096_vm1 = vweird.f32 %v2498_v58  ;;  %vm1256_vm4 = vweird.f32 %v2510_v19 }
 0x194   :  { %1786 = vrsqrt.f32 %v2527_v39  ;;  %vm1246_vm7 = vweird.f32 %v2527_v39 }
 0x195   :  { %v467_v49 = vpop.f32.mrf.mxu1 }
 0x196   :  { %v2518_v42 = vpop.eup %1778  ;;  %v637_v16 = vmul.f32 0.0078125, %v467_v49  ;;  %v1083_v49 = vmul.f32 0.5, %v1082_v7  ;;  %v683_v7 = vmul.f32 0.0078125, %v2500_v26 }
 0x197   :  { %1427 = vperm.xlu2 %1680, %v1209_v1   ;;  %v1101_v24 = vmul.f32 %v2518_v42, %v2482_v14  ;;  %v2531_v48 = vpop.eup %1780  ;;  %vm1107_vm10 = vweird.f32 %v2518_v42 }
 0x198   :  { %v512_v29 = vpop.f32.mrf.mxu3  ;;  %1357 = vperm.xlu1 %1682, %v1069_v23   ;;  %v2535_v62 = vpop.eup %1782  ;;  %v1231_v36 = vmul.f32 %v2531_v48, %v2492_v5  ;;  %v651_v23 = vmul.f32 0.0078125, %v2477_v45  ;;  %vm1108_vm12 = vmor %vm1106_vm11, %vm1107_vm10  ;;  %vm1237_vm13 = vweird.f32 %v2531_v48 }
 0x199   :  { %v583_v21 = vpop.xlane.xlu1 %582  ;;  %v1102_v43 = vmul.f32 %v2518_v42, %v1101_v24  ;;  %v2544_v20 = vpop.eup %1784  ;;  %vm1097_vm14 = vweird.f32 %v2535_v62  ;;  %vm1238_vm0 = vmor %vm1236_vm15, %vm1237_vm13 }
 0x19a   :  { %v668_v37 = vmul.f32 0.0078125, %v583_v21  ;;  %v587_v31 = vpop.xlane.xlu0 %586  ;;  %v1232_v24 = vmul.f32 %v2531_v48, %v1231_v36  ;;  %v2559_v21 = vpop.eup %1786  ;;  %v715_v28 = vmul.f32 %v651_v23, %v651_v23  ;;  %vm1257_vm2 = vweird.f32 %v2544_v20  ;;  %vm1098_vm3 = vmor %vm1096_vm1, %vm1097_vm14 }
 0x19b   :  { %1437 = vperm.xlu0 %1681, %v1229_v12   ;;  %v1251_v12 = vmul.f32 %v2544_v20, %v2510_v19  ;;  %v1103_v0 = vmul.f32 0.5, %v1102_v43  ;;  %v670_v18 = vmul.f32 0.0078125, %v587_v31  ;;  %v652_v43 = vmul.f32 0.0078125, %v512_v29  ;;  %vm1258_vm5 = vmor %vm1256_vm4, %vm1257_vm2 }
 0x19c   :  { %v732_v1 = vsub.f32 %v668_v37, %v700_v4  ;;  %v1241_v26 = vmul.f32 %v2559_v21, %v2527_v39  ;;  %v669_v29 = vmul.f32 0.0078125, %v2515_v8  ;;  %vm1247_vm6 = vweird.f32 %v2559_v21 }
 0x19d   :  { %v470_v22 = vpop.f32.mrf.mxu1  ;;  %v1104_v36 = vsub.f32 1.5, %v1103_v0  ;;  %v685_v0 = vmul.f32 0.0078125, %v2512_v35  ;;  %vm1248_vm8 = vmor %vm1246_vm7, %vm1247_vm6 }
 0x19e   :  { %v2538_v15 = vmul.f32 0.0078125, %v470_v22  ;;  %v1084_v22 = vsub.f32 1.5, %v1083_v49  ;;  %v764_v37 = vmax.f32 %v732_v1, 0.0  ;;  %v701_v49 = vmul.f32 %v637_v16, %v637_v16 }
 0x19f   :  { %833 = vperm.xlu2 %1680, %v2448_v46   ;;  %v1091_v46 = vmul.f32 %v2535_v62, %v2498_v58 }
 0x1a0   :  { %v515_v47 = vpop.f32.mrf.mxu3  ;;  %1432 = vperm.xlu1 %1682, %v1219_v63   ;;  %v702_v44 = vmul.f32 %v2538_v15, %v2538_v15  ;;  %v733_v30 = vsub.f32 %v669_v29, %v701_v49 }
 0x1a1   :  { %v1092_v63 = vmul.f32 %v2535_v62, %v1091_v46  ;;  %v2562_v45 = vmul.f32 0.0078125, %v515_v47  ;;  %v1252_v46 = vmul.f32 %v2544_v20, %v1251_v12  ;;  %v747_v12 = vsub.f32 %v683_v7, %v715_v28  ;;  %v2591_v7 = vpop.xlane.xlu1 %618 }
 0x1a2   :  { %v2541_v54 = vpop.xlane.xlu2 %620  ;;  %v734_v31 = vsub.f32 %v670_v18, %v702_v44  ;;  %v2580_v44 = vadd.f32 1e-05, %v764_v37  ;;  %v1242_v28 = vmul.f32 %v2559_v21, %v1241_v26 }
 0x1a3   :  { %843 = vperm.xlu0 %1681, %v637_v16   ;;  %v1093_v1 = vmul.f32 0.5, %v1092_v63  ;;  %v717_v16 = vmul.f32 %v2562_v45, %v2562_v45  ;;  %v1253_v8 = vmul.f32 0.5, %v1252_v46 }
 0x1a4   :  { %v766_v18 = vmax.f32 %v734_v31, 0.0  ;;  %1788 = vrsqrt.f32 %v2580_v44  ;;  %v779_v31 = vmax.f32 %v747_v12, 0.0  ;;  %vm1116_vm10 = vweird.f32 %v2580_v44 }
 0x1a5   :  { %v2553_v40 = vpop.f32.mrf.mxu1  ;;  %v1094_v63 = vsub.f32 1.5, %v1093_v1  ;;  %v749_v35 = vsub.f32 %v685_v0, %v717_v16  ;;  %v1254_v26 = vsub.f32 1.5, %v1253_v8  ;;  %v684_v1 = vmul.f32 0.0078125, %v2475_v53 }
 0x1a6   :  { %v2597_v49 = vadd.f32 1e-05, %v766_v18 }
 0x1a7   :  { %908 = vperm.xlu2 %1680, %v2456_v41   ;;  %v1085_v41 = vmul.f32 %v2504_v57, %v1084_v22  ;;  %v1105_v22 = vmul.f32 %v2518_v42, %v1104_v36  ;;  %v716_v36 = vmul.f32 %v652_v43, %v652_v43  ;;  %v781_v29 = vmax.f32 %v749_v35, 0.0 }
 0x1a8   :  { %v2565_v4 = vpop.f32.mrf.mxu3  ;;  %838 = vperm.xlu1 %1682, %v636_v33   ;;  %v1233_v33 = vmul.f32 0.5, %v1232_v24  ;;  %1790 = vrsqrt.f32 %v2597_v49  ;;  %v1255_v5 = vmul.f32 %v2544_v20, %v1254_v26  ;;  %v639_v26 = vmul.f32 0.0078125, %v2553_v40 }
 0x1a9   :  { %v1089_v24 = vsel %vm1088_vm9, %v2504_v57, %v1085_v41  ;;  %v765_v57 = vmax.f32 %v733_v30, 0.0  ;;  %v1109_v46 = vsel %vm1108_vm12, %v2518_v42, %v1105_v22  ;;  %v2610_v30 = vadd.f32 1e-05, %v779_v31 }
 0x1aa   :  { %v2567_v34 = vpop.xlane.xlu2 %590  ;;  %v2573_v47 = vpop.xlane.xlu0 %622  ;;  %v1234_v61 = vsub.f32 1.5, %v1233_v33  ;;  %v1243_v33 = vmul.f32 0.5, %v1242_v28  ;;  %v748_v12 = vsub.f32 %v684_v1, %v716_v36  ;;  %v2628_v58 = vadd.f32 1e-05, %v781_v29 }
 0x1ab   :  { %918 = vperm.xlu0 %1681, %v652_v43   ;;  %v2617_v16 = vadd.f32 1e-05, %v765_v57  ;;  %v2624_v0 = vpop.eup %1788  ;;  %1792 = vrsqrt.f32 %v2610_v30  ;;  %v1259_v31 = vsel %vm1258_vm5, %v2544_v20, %v1255_v5  ;;  %v703_v5 = vmul.f32 %v639_v26, %v639_v26 }
 0x1ac   :  { %v1235_v14 = vmul.f32 %v2531_v48, %v1234_v61  ;;  %v1244_v8 = vsub.f32 1.5, %v1243_v33  ;;  %v1111_v36 = vmul.f32 %v2624_v0, %v2580_v44  ;;  %vm1117_vm9 = vweird.f32 %v2624_v0 }
 0x1ad   :  { %v2583_v52 = vpop.f32.mrf.mxu1  ;;  %1794 = vrsqrt.f32 %v2617_v16  ;;  %vm1266_vm11 = vweird.f32 %v2610_v30  ;;  %vm1118_vm12 = vmor %vm1116_vm10, %vm1117_vm9  ;;  %vm1136_vm14 = vweird.f32 %v2597_v49  ;;  %vm1126_vm2 = vweird.f32 %v2617_v16 }
 0x1ae   :  { %v1239_v18 = vsel %vm1238_vm0, %v2531_v48, %v1235_v14  ;;  %v780_v48 = vmax.f32 %v748_v12, 0.0  ;;  %v2640_v57 = vpop.eup %1790  ;;  %1796 = vrsqrt.f32 %v2628_v58  ;;  %v640_v1 = vmul.f32 0.0078125, %v2583_v52 }
 0x1af   :  { %1367 = vperm.xlu2 %1680, %v1089_v24   ;;  %v1131_v33 = vmul.f32 %v2640_v57, %v2597_v49  ;;  %vm1137_vm13 = vweird.f32 %v2640_v57  ;;  %vm1286_vm6 = vweird.f32 %v2628_v58 }
 0x1b0   :  { %v2593_v37 = vpop.f32.mrf.mxu3  ;;  %913 = vperm.xlu1 %1682, %v651_v23   ;;  %v1095_v23 = vmul.f32 %v2535_v62, %v1094_v63  ;;  %vm1138_vm0 = vmor %vm1136_vm14, %vm1137_vm13 }
 0x1b1   :  { %v2658_v29 = vpop.eup %1792 }
 0x1b2   :  { %v2603_v41 = vpop.permute.xlu2 %788  ;;  %v593_v42 = vpop.xlane.xlu0 %592  ;;  %v1099_v22 = vsel %vm1098_vm3, %v2535_v62, %v1095_v23  ;;  %v2653_v23 = vadd.f32 1e-05, %v780_v48  ;;  %vm1267_vm15 = vweird.f32 %v2658_v29 }
 0x1b3   :  { %1377 = vperm.xlu0 %1681, %v1109_v46   ;;  %v673_v24 = vmul.f32 0.0078125, %v593_v42  ;;  %v589_v62 = vpop.xlane.xlu1 %588  ;;  %v1245_v46 = vmul.f32 %v2559_v21, %v1244_v8  ;;  %v688_v42 = vmul.f32 0.0078125, %v2573_v47  ;;  %v2663_v12 = vpop.eup %1794  ;;  %v704_v8 = vmul.f32 %v640_v1, %v640_v1  ;;  %vm2760_vm3 = vmor %vm1266_vm11, %vm1267_vm15 }
 0x1b4   :  { %1798 = vrsqrt.f32 %v2653_v23  ;;  %v671_v52 = vmul.f32 0.0078125, %v589_v62  ;;  %v672_v62 = vmul.f32 0.0078125, %v2567_v34  ;;  %vm1127_vm1 = vweird.f32 %v2663_v12 }
 0x1b5   :  { %v479_v43 = vpop.f32.mrf.mxu1  ;;  %v1249_v40 = vsel %vm1248_vm8, %v2559_v21, %v1245_v46  ;;  %v1132_v21 = vmul.f32 %v2640_v57, %v1131_v33  ;;  %vm1128_vm5 = vmor %vm1126_vm2, %vm1127_vm1  ;;  %vm1276_vm9 = vweird.f32 %v2653_v23 }
 0x1b6   :  { %v2619_v53 = vmul.f32 0.0078125, %v479_v43  ;;  %v1112_v43 = vmul.f32 %v2624_v0, %v1111_v36  ;;  %v735_v48 = vsub.f32 %v671_v52, %v703_v5  ;;  %v655_v36 = vmul.f32 0.0078125, %v2593_v37 }
 0x1b7   :  { %1442 = vperm.xlu2 %1680, %v1239_v18   ;;  %v1133_v33 = vmul.f32 0.5, %v1132_v21  ;;  %v686_v37 = vmul.f32 0.0078125, %v2591_v7 }
 0x1b8   :  { %v705_v61 = vmul.f32 %v2619_v53, %v2619_v53  ;;  %v524_v63 = vpop.f32.mrf.mxu3  ;;  %1372 = vperm.xlu1 %1682, %v1099_v22   ;;  %v2668_v22 = vpop.eup %1796  ;;  %v767_v34 = vmax.f32 %v735_v48, 0.0  ;;  %v719_v5 = vmul.f32 %v655_v36, %v655_v36 }
 0x1b9   :  { %v2634_v28 = vmul.f32 0.0078125, %v524_v63  ;;  %v1113_v63 = vmul.f32 0.5, %v1112_v43  ;;  %vm1287_vm4 = vweird.f32 %v2668_v22 }
 0x1ba   :  { %v737_v35 = vsub.f32 %v673_v24, %v705_v61  ;;  %v2644_v19 = vpop.permute.xlu2 %803  ;;  %v1261_v24 = vmul.f32 %v2658_v29, %v2610_v30  ;;  %vm1288_vm7 = vmor %vm1286_vm6, %vm1287_vm4 }
 0x1bb   :  { %1452 = vperm.xlu0 %1681, %v1259_v31   ;;  %v720_v20 = vmul.f32 %v2634_v28, %v2634_v28  ;;  %v2671_v47 = vpop.xlane.xlu1 %624  ;;  %v1281_v31 = vmul.f32 %v2668_v22, %v2628_v58 }
 0x1bc   :  { %v769_v14 = vmax.f32 %v737_v35, 0.0  ;;  %v654_v35 = vmul.f32 0.0078125, %v2565_v4  ;;  %v2690_v4 = vpop.eup %1798 }
 0x1bd   :  { %v752_v18 = vsub.f32 %v688_v42, %v720_v20  ;;  %v736_v20 = vsub.f32 %v672_v62, %v704_v8  ;;  %v1114_v42 = vsub.f32 1.5, %v1113_v63  ;;  %v1282_v52 = vmul.f32 %v2668_v22, %v1281_v31 }
 0x1be   :  { %v2666_v39 = vadd.f32 1e-05, %v769_v14  ;;  %v718_v43 = vmul.f32 %v654_v35, %v654_v35  ;;  %v687_v8 = vmul.f32 0.0078125, %v2541_v54  ;;  %v2708_v54 = vadd.f32 1e-05, %v767_v34 }
 0x1bf   :  { %848 = vperm.xlu2 %1680, %v2538_v15   ;;  %v1121_v15 = vmul.f32 %v2663_v12, %v2617_v16  ;;  %v784_v46 = vmax.f32 %v752_v18, 0.0  ;;  %v768_v21 = vmax.f32 %v736_v20, 0.0  ;;  %v1283_v27 = vmul.f32 0.5, %v1282_v52 }
 0x1c0   :  { %1447 = vperm.xlu1 %1682, %v1249_v40   ;;  %1800 = vrsqrt.f32 %v2666_v39  ;;  %v751_v20 = vsub.f32 %v687_v8, %v719_v5  ;;  %vm1277_vm8 = vweird.f32 %v2690_v4 }
 0x1c1   :  { %v1122_v40 = vmul.f32 %v2663_v12, %v1121_v15  ;;  %v2694_v18 = vadd.f32 1e-05, %v784_v46  ;;  %v1134_v15 = vsub.f32 1.5, %v1133_v33  ;;  %v750_v46 = vsub.f32 %v686_v37, %v718_v43  ;;  %vm1278_vm11 = vmor %vm1276_vm9, %vm1277_vm8 }
 0x1c2   :  { %v2678_v61 = vpop.permute.xlu2 %878  ;;  %v783_v5 = vmax.f32 %v751_v20, 0.0 }
 0x1c3   :  { %858 = vperm.xlu0 %1681, %v640_v1   ;;  %v1262_v1 = vmul.f32 %v2658_v29, %v1261_v24  ;;  %v527_v24 = vpop.f32.mrf.mxu3  ;;  %v1123_v31 = vmul.f32 0.5, %v1122_v40  ;;  %1802 = vrsqrt.f32 %v2694_v18  ;;  %v1135_v44 = vmul.f32 %v2640_v57, %v1134_v15 }
 0x1c4   :  { %v2713_v33 = vmul.f32 0.0078125, %v527_v24  ;;  %1804 = vrsqrt.f32 %v2708_v54  ;;  %v782_v37 = vmax.f32 %v750_v46, 0.0  ;;  %v2751_v46 = vld [vmem:[#allocation7 + $0x2] ss:$0 sm:$0xff]  ;;  %v2754_v20 = vadd.f32 1e-05, %v783_v5 }
 0x1c5   :  { %v2686_v14 = vpop.permute.xlu0 %793  ;;  %v1263_v62 = vmul.f32 0.5, %v1262_v1  ;;  %v1124_v34 = vsub.f32 1.5, %v1123_v31  ;;  %v1139_v49 = vsel %vm1138_vm0, %v2640_v57, %v1135_v44  ;;  %vm1316_vm15 = vweird.f32 %v2694_v18 }
 0x1c6   :  { %v2701_v48 = vpop.eup %1800  ;;  %v721_v52 = vmul.f32 %v2713_v33, %v2713_v33  ;;  %v947_v8 = vsub.f32 %v2077_v56, %v2686_v14  ;;  %v2747_v56 = vadd.f32 1e-05, %v782_v37  ;;  %v946_v14 = vsub.f32 %v2063_v6, %v2603_v41 }
 0x1c7   :  { %923 = vperm.xlu2 %1680, %v2562_v45   ;;  %v1271_v45 = vmul.f32 %v2690_v4, %v2653_v23  ;;  %v1264_v40 = vsub.f32 1.5, %v1263_v62  ;;  %v1125_v62 = vmul.f32 %v2663_v12, %v1124_v34  ;;  %vm1167_vm10 = vweird.f32 %v2701_v48 }
 0x1c8   :  { %853 = vperm.xlu1 %1682, %v639_v26   ;;  %v1115_v26 = vmul.f32 %v2624_v0, %v1114_v42  ;;  %v1161_v42 = vmul.f32 %v2701_v48, %v2666_v39  ;;  %vm1296_vm9 = vweird.f32 %v2747_v56 }
 0x1c9   :  { %v1272_v43 = vmul.f32 %v2690_v4, %v1271_v45  ;;  %v2742_v15 = vpop.eup %1802  ;;  %v689_v45 = vmul.f32 0.0078125, %v2671_v47 }
 0x1ca   :  { %v2698_v63 = vpop.permute.xlu1 %868  ;;  %v2705_v7 = vpop.permute.xlu2 %808  ;;  %v1119_v1 = vsel %vm1118_vm12, %v2624_v0, %v1115_v26  ;;  %v1284_v0 = vsub.f32 1.5, %v1283_v27  ;;  %v1162_v24 = vmul.f32 %v2701_v48, %v1161_v42  ;;  %v1265_v27 = vmul.f32 %v2658_v29, %v1264_v40 }
 0x1cb   :  { %933 = vperm.xlu0 %1681, %v655_v36   ;;  %v2717_v36 = vadd.f32 1e-05, %v768_v21  ;;  %v1273_v31 = vmul.f32 0.5, %v1272_v43  ;;  %v753_v47 = vsub.f32 %v689_v45, %v721_v52  ;;  %v2766_v6 = vpop.eup %1804  ;;  %v1311_v41 = vmul.f32 %v2742_v15, %v2694_v18 }
 0x1cc   :  { %v1163_v30 = vmul.f32 0.5, %v1162_v24  ;;  %v1269_v34 = vsel %vm2760_vm3, %v2658_v29, %v1265_v27  ;;  %v1129_v43 = vsel %vm1128_vm5, %v2663_v12, %v1125_v62  ;;  %v1141_v29 = vmul.f32 %v2766_v6, %v2708_v54 }
 0x1cd   :  { %v2715_v32 = vpop.permute.xlu0 %873  ;;  %1806 = vrsqrt.f32 %v2717_v36  ;;  %v1274_v37 = vsub.f32 1.5, %v1273_v31  ;;  %v785_v58 = vmax.f32 %v753_v47, 0.0  ;;  %vm1166_vm12 = vweird.f32 %v2666_v39 }
 0x1ce   :  { %1808 = vrsqrt.f32 %v2747_v56  ;;  %v1164_v45 = vsub.f32 1.5, %v1163_v30  ;;  %vm1168_vm13 = vmor %vm1166_vm12, %vm1167_vm10  ;;  %vm1317_vm14 = vweird.f32 %v2742_v15  ;;  %vm1147_vm1 = vweird.f32 %v2766_v6 }
 0x1cf   :  { %1382 = vperm.xlu2 %1680, %v1119_v1   ;;  %v1285_v1 = vmul.f32 %v2668_v22, %v1284_v0  ;;  %1810 = vrsqrt.f32 %v2754_v20  ;;  %v1275_v31 = vmul.f32 %v2690_v4, %v1274_v37  ;;  %vm1318_vm0 = vmor %vm1316_vm15, %vm1317_vm14  ;;  %vm1146_vm3 = vweird.f32 %v2708_v54 }
 0x1d0   :  { %928 = vperm.xlu1 %1682, %v654_v35   ;;  %v2738_v35 = vld [vmem:[#allocation7 + $0x1] ss:$0 sm:$0xff]  ;;  %vm1148_vm4 = vmor %vm1146_vm3, %vm1147_vm1  ;;  %vm1156_vm5 = vweird.f32 %v2717_v36 }
 0x1d1   :  { %v1289_v12 = vsel %vm1288_vm7, %v2668_v22, %v1285_v1 }
 0x1d2   :  { %v2736_v21 = vpop.permute.xlu1 %798  ;;  %v1338_v26 = vpop.permute.xlu2 %1337 }
 0x1d3   :  { %1392 = vperm.xlu0 %1681, %v1139_v49   ;;  %v1491_v57 = vmul.f32 %v1338_v26, %v947_v8  ;;  %v2778_v5 = vpop.eup %1806  ;;  %v962_v8 = vsub.f32 %v2070_v50, %v2698_v63  ;;  %v1312_v26 = vmul.f32 %v2742_v15, %v1311_v41  ;;  %v1142_v63 = vmul.f32 %v2766_v6, %v1141_v29 }
 0x1d4   :  { %v1151_v27 = vmul.f32 %v2778_v5, %v2717_v36  ;;  %v1279_v41 = vsel %vm1278_vm11, %v2690_v4, %v1275_v31  ;;  %vm1157_vm2 = vweird.f32 %v2778_v5  ;;  %v963_v36 = vsub.f32 %v2084_v3, %v2715_v32 }
 0x1d5   :  { %v1333_v42 = vpop.permute.xlu0 %1332  ;;  %v1524_v16 = vmul.f32 %v2738_v35, %v1491_v57  ;;  %v2806_v57 = vadd.f32 1e-05, %v785_v58  ;;  %v1313_v44 = vmul.f32 0.5, %v1312_v26  ;;  %vm1158_vm6 = vmor %vm1156_vm5, %vm1157_vm2  ;;  %vm1306_vm11 = vweird.f32 %v2754_v20 }
 0x1d6   :  { %v1490_v40 = vmul.f32 %v1333_v42, %v946_v14  ;;  %v2804_v14 = vpop.eup %1808  ;;  %v1165_v42 = vmul.f32 %v2701_v48, %v1164_v45  ;;  %v1152_v23 = vmul.f32 %v2778_v5, %v1151_v27 }
 0x1d7   :  { %v1557_v52 = vadd.f32 %v2751_v46, %v1524_v16  ;;  %1457 = vperm.xlu2 %1680, %v1269_v34   ;;  %v2810_v1 = vpop.eup %1810  ;;  %1812 = vrsqrt.f32 %v2806_v57  ;;  %v1314_v34 = vsub.f32 1.5, %v1313_v44  ;;  %vm1297_vm7 = vweird.f32 %v2804_v14 }
 0x1d8   :  { %v1523_v0 = vmul.f32 %v2738_v35, %v1490_v40  ;;  %1387 = vperm.xlu1 %1682, %v1129_v43   ;;  %v1291_v40 = vmul.f32 %v2804_v14, %v2747_v56  ;;  %v1169_v4 = vsel %vm1168_vm13, %v2701_v48, %v1165_v42  ;;  %v1143_v43 = vmul.f32 0.5, %v1142_v63  ;;  %vm1298_vm10 = vmor %vm1296_vm9, %vm1297_vm7 }
 0x1d9   :  { %1589 = vst [vmem:[#allocation8 + $0x8] sm:$0xff] %v1557_v52  ;;  %v1153_v39 = vmul.f32 0.5, %v1152_v23  ;;  %v949_v52 = vsub.f32 %v2105_v60, %v2644_v19  ;;  %v948_v60 = vsub.f32 %v2091_v10, %v2736_v21  ;;  %v964_v63 = vsub.f32 %v2098_v55, %v2678_v61 }
 0x1da   :  { %v1556_v49 = vadd.f32 %v2751_v46, %v1523_v0  ;;  %v2792_v24 = vpop.permute.xlu1 %883  ;;  %v1413_v62 = vpop.permute.xlu2 %1412  ;;  %v1292_v29 = vmul.f32 %v2804_v14, %v1291_v40  ;;  %v1144_v48 = vsub.f32 1.5, %v1143_v43  ;;  %vm1307_vm8 = vweird.f32 %v2810_v1 }
 0x1db   :  { %1467 = vperm.xlu0 %1681, %v1289_v12   ;;  %v1506_v22 = vmul.f32 %v1413_v62, %v962_v8  ;;  %v1315_v12 = vmul.f32 %v2742_v15, %v1314_v34  ;;  %v1154_v8 = vsub.f32 1.5, %v1153_v39  ;;  %vm1308_vm12 = vmor %vm1306_vm11, %vm1307_vm8  ;;  %v965_v56 = vsub.f32 %v2112_v9, %v2792_v24 }
 0x1dc   :  { %1588 = vst [vmem:[#allocation8] sm:$0xff] %v1556_v49  ;;  %v1293_v19 = vmul.f32 0.5, %v1292_v29  ;;  %vm1326_vm14 = vweird.f32 %v2806_v57 }
 0x1dd   :  { %v2799_v50 = vpop.permute.xlu0 %888  ;;  %v1539_v47 = vmul.f32 %v2738_v35, %v1506_v22  ;;  %v2835_v45 = vpop.eup %1812  ;;  %v1319_v31 = vsel %vm1318_vm0, %v2742_v15, %v1315_v12  ;;  %v1145_v22 = vmul.f32 %v2766_v6, %v1144_v48  ;;  %v1155_v10 = vmul.f32 %v2778_v5, %v1154_v8 }
 0x1de   :  { %vm1327_vm13 = vweird.f32 %v2835_v45 }
 0x1df   :  { %v1572_v16 = vadd.f32 %v2751_v46, %v1539_v47  ;;  %863 = vperm.xlu2 %1680, %v2619_v53   ;;  %v1301_v53 = vmul.f32 %v2810_v1, %v2754_v20  ;;  %v1149_v44 = vsel %vm1148_vm4, %v2766_v6, %v1145_v22  ;;  %v1159_v61 = vsel %vm1158_vm6, %v2778_v5, %v1155_v10  ;;  %vm1328_vm15 = vmor %vm1326_vm14, %vm1327_vm13 }
 0x1e0   :  { %1462 = vperm.xlu1 %1682, %v1279_v41   ;;  %v1294_v41 = vsub.f32 1.5, %v1293_v19  ;;  %v950_v6 = vsub.f32 %v2117_v13, %v2705_v7 }
 0x1e1   :  { %1604 = vst [vmem:[#allocation8 + $0x80] sm:$0xff] %v1572_v16  ;;  %v1302_v49 = vmul.f32 %v2810_v1, %v1301_v53 }
 0x1e2   :  { %v2822_v30 = vpop.permute.xlu1 %813  ;;  %v2827_v37 = vpop.permute.xlu2 %818  ;;  %v1295_v34 = vmul.f32 %v2804_v14, %v1294_v41 }
 0x1e3   :  { %1407 = vperm.xlu0 %1681, %v1169_v4   ;;  %v1303_v21 = vmul.f32 0.5, %v1302_v49  ;;  %v952_v19 = vsub.f32 %v2145_v38, %v2827_v37 }
 0x1e5   :  { %v1348_v0 = vpop.permute.xlu0 %1347  ;;  %v1304_v54 = vsub.f32 1.5, %v1303_v21 }
 0x1e6   :  { %v1493_v58 = vmul.f32 %v1348_v0, %v949_v52  ;;  %v1299_v0 = vsel %vm1298_vm10, %v2804_v14, %v1295_v34 }
 0x1e7   :  { %938 = vperm.xlu2 %1680, %v2634_v28   ;;  %v1321_v28 = vmul.f32 %v2835_v45, %v2806_v57  ;;  %v1305_v53 = vmul.f32 %v2810_v1, %v1304_v54  ;;  %v951_v57 = vsub.f32 %v2131_v51, %v2822_v30  ;;  %v966_v51 = vsub.f32 %v2126_v59, %v2799_v50 }
 0x1e8   :  { %v1526_v26 = vmul.f32 %v2738_v35, %v1493_v58  ;;  %943 = vperm.xlu1 %1682, %v2713_v33  }
 0x1e9   :  { %v1322_v23 = vmul.f32 %v2835_v45, %v1321_v28  ;;  %v1309_v29 = vsel %vm1308_vm12, %v2810_v1, %v1305_v53 }
 0x1ea   :  { %v1559_v27 = vadd.f32 %v2751_v46, %v1526_v26  ;;  %v1343_v62 = vpop.permute.xlu1 %1342  ;;  %v2850_v33 = vpop.permute.xlu2 %893 }
 0x1eb   :  { %v1492_v18 = vmul.f32 %v1343_v62, %v948_v60  ;;  %1482 = vperm.xlu0 %1681, %v1319_v31   ;;  %v1323_v39 = vmul.f32 0.5, %v1322_v23  ;;  %v967_v10 = vsub.f32 %v2138_v11, %v2850_v33 }
 0x1ec   :  { %1591 = vst [vmem:[#allocation8 + $0x18] sm:$0xff] %v1559_v27 }
 0x1ed   :  { %v1525_v15 = vmul.f32 %v2738_v35, %v1492_v18  ;;  %v1423_v47 = vpop.permute.xlu0 %1422  ;;  %v1324_v58 = vsub.f32 1.5, %v1323_v39 }
 0x1ee   :  { %v1508_v42 = vmul.f32 %v1423_v47, %v964_v63 }
 0x1ef   :  { %v1558_v55 = vadd.f32 %v2751_v46, %v1525_v15  ;;  %1397 = vperm.xlu2 %1680, %v1149_v44   ;;  %v1325_v8 = vmul.f32 %v2835_v45, %v1324_v58 }
 0x1f0   :  { %v1541_v16 = vmul.f32 %v2738_v35, %v1508_v42  ;;  %1402 = vperm.xlu1 %1682, %v1159_v61  }
 0x1f1   :  { %1590 = vst [vmem:[#allocation8 + $0x10] sm:$0xff] %v1558_v55  ;;  %v1329_v26 = vsel %vm1328_vm15, %v2835_v45, %v1325_v8  ;;  %v3033_v8 = vld [vmem:[#allocation12_spill] sm:$0xff] }
 0x1f2   :  { %v1574_v40 = vadd.f32 %v2751_v46, %v1541_v16  ;;  %v1418_v4 = vpop.permute.xlu1 %1417  ;;  %v1353_v43 = vpop.permute.xlu2 %1352 }
 0x1f3   :  { %v1507_v5 = vmul.f32 %v1418_v4, %v963_v36  ;;  %v1494_v3 = vmul.f32 %v1353_v43, %v950_v6 }
 0x1f4   :  { %1606 = vst [vmem:[#allocation8 + $0x90] sm:$0xff] %v1574_v40 }
 0x1f5   :  { %v1540_v13 = vmul.f32 %v2738_v35, %v1507_v5  ;;  %v2878_v32 = vpop.permute.xlu0 %828  ;;  %v1527_v7 = vmul.f32 %v2738_v35, %v1494_v3 }
 0x1f7   :  { %v1573_v52 = vadd.f32 %v2751_v46, %v1540_v13  ;;  %v1560_v12 = vadd.f32 %v2751_v46, %v1527_v7  ;;  %1472 = vperm.xlu2 %1680, %v1299_v0  }
 0x1f8   :  { %1477 = vperm.xlu1 %1682, %v1309_v29   ;;  %v3032_v29 = vld [vmem:[#allocation14_spill] sm:$0xff] }
 0x1f9   :  { %1605 = vst [vmem:[#allocation8 + $0x88] sm:$0xff] %v1573_v52 }
 0x1fa   :  { %1592 = vst [vmem:[#allocation8 + $0x20] sm:$0xff] %v1560_v12  ;;  %v824_v20 = vpop.permute.xlu1 %823  ;;  %v1428_v48 = vpop.permute.xlu2 %1427 }
 0x1fb   :  { %v1509_v49 = vmul.f32 %v1428_v48, %v965_v56  ;;  %v953_v30 = vsub.f32 %v2161_v25, %v824_v20 }
 0x1fd   :  { %v2890_v14 = vpop.permute.xlu0 %903  ;;  %v1542_v1 = vmul.f32 %v2738_v35, %v1509_v49 }
 0x1fe   :  { %v969_v49 = vsub.f32 %v3033_v8, %v2890_v14 }
 0x1ff   :  { %v1575_v60 = vadd.f32 %v2751_v46, %v1542_v1  ;;  %1487 = vperm.xlu2 %1680, %v1329_v26  }
 0x201   :  { %1607 = vst [vmem:[#allocation8 + $0x98] sm:$0xff] %v1575_v60 }
 0x202   :  { %v899_v9 = vpop.permute.xlu1 %898  ;;  %v834_v24 = vpop.permute.xlu2 %833 }
 0x203   :  { %v968_v25 = vsub.f32 %v2152_v17, %v899_v9  ;;  %v955_v5 = vsub.f32 %v2189_v2, %v834_v24  ;;  %v3031_v17 = vld [vmem:[#allocation13_spill] sm:$0xff] }
 0x204   :  { %v954_v3 = vsub.f32 %v3031_v17, %v2878_v32  ;;  %v3034_v32 = vld [vmem:[#allocation16_spill] sm:$0xff] }
 0x205   :  { %v1363_v27 = vpop.permute.xlu0 %1362 }
 0x206   :  { %v1496_v62 = vmul.f32 %v1363_v27, %v952_v19 }
 0x208   :  { %v1529_v31 = vmul.f32 %v2738_v35, %v1496_v62 }
 0x20a   :  { %v1562_v22 = vadd.f32 %v2751_v46, %v1529_v31  ;;  %v1358_v28 = vpop.permute.xlu1 %1357  ;;  %v909_v18 = vpop.permute.xlu2 %908 }
 0x20b   :  { %v1495_v45 = vmul.f32 %v1358_v28, %v951_v57  ;;  %v970_v58 = vsub.f32 %v3032_v29, %v909_v18 }
 0x20c   :  { %1594 = vst [vmem:[#allocation8 + $0x30] sm:$0xff] %v1562_v22  ;;  %v3035_v22 = vld [vmem:[#allocation15_spill] sm:$0xff] }
 0x20d   :  { %v1528_v21 = vmul.f32 %v2738_v35, %v1495_v45  ;;  %v1438_v63 = vpop.permute.xlu0 %1437 }
 0x20e   :  { %v1511_v38 = vmul.f32 %v1438_v63, %v967_v10 }
 0x20f   :  { %v1561_v37 = vadd.f32 %v2751_v46, %v1528_v21 }
 0x210   :  { %v1544_v15 = vmul.f32 %v2738_v35, %v1511_v38 }
 0x211   :  { %1593 = vst [vmem:[#allocation8 + $0x28] sm:$0xff] %v1561_v37 }
 0x212   :  { %v1577_v47 = vadd.f32 %v2751_v46, %v1544_v15  ;;  %v1433_v42 = vpop.permute.xlu1 %1432  ;;  %v1368_v11 = vpop.permute.xlu2 %1367 }
 0x213   :  { %v1510_v44 = vmul.f32 %v1433_v42, %v966_v51  ;;  %v1497_v33 = vmul.f32 %v1368_v11, %v953_v30  ;;  %v3036_v51 = vld [vmem:[#allocation20_spill] sm:$0xff]  ;;  %v3037_v11 = vld [vmem:[#allocation18_spill] sm:$0xff] }
 0x214   :  { %1609 = vst [vmem:[#allocation8 + $0xa8] sm:$0xff] %v1577_v47 }
 0x215   :  { %v1543_v41 = vmul.f32 %v2738_v35, %v1510_v44  ;;  %v2912_v55 = vpop.permute.xlu0 %843  ;;  %v1530_v61 = vmul.f32 %v2738_v35, %v1497_v33 }
 0x216   :  { %v957_v33 = vsub.f32 %v3037_v11, %v2912_v55  ;;  %v3040_v55 = vld [vmem:[#allocation22_spill] sm:$0xff] }
 0x217   :  { %v1576_v54 = vadd.f32 %v2751_v46, %v1543_v41  ;;  %v1563_v59 = vadd.f32 %v2751_v46, %v1530_v61 }
 0x219   :  { %1608 = vst [vmem:[#allocation8 + $0xa0] sm:$0xff] %v1576_v54 }
 0x21a   :  { %1595 = vst [vmem:[#allocation8 + $0x38] sm:$0xff] %v1563_v59  ;;  %v839_v50 = vpop.permute.xlu1 %838  ;;  %v1443_v23 = vpop.permute.xlu2 %1442 }
 0x21b   :  { %v1512_v16 = vmul.f32 %v1443_v23, %v968_v25  ;;  %v956_v1 = vsub.f32 %v3034_v32, %v839_v50  ;;  %v3038_v25 = vld [vmem:[#allocation19_spill] sm:$0xff] }
 0x21d   :  { %v2918_v36 = vpop.permute.xlu0 %918  ;;  %v1545_v6 = vmul.f32 %v2738_v35, %v1512_v16 }
 0x21f   :  { %v1578_v40 = vadd.f32 %v2751_v46, %v1545_v6 }
 0x221   :  { %1610 = vst [vmem:[#allocation8 + $0xb0] sm:$0xff] %v1578_v40 }
 0x222   :  { %v914_v4 = vpop.permute.xlu1 %913  ;;  %v849_v34 = vpop.permute.xlu2 %848 }
 0x223   :  { %v971_v28 = vsub.f32 %v3035_v22, %v914_v4  ;;  %v958_v30 = vsub.f32 %v3036_v51, %v849_v34  ;;  %v3039_v34 = vld [vmem:[#allocation17_spill] sm:$0xff]  ;;  %v3045_v22 = vld [vmem:[#allocation27_spill] sm:$0xff] }
 0x225   :  { %v1378_v43 = vpop.permute.xlu0 %1377 }
 0x226   :  { %v1499_v53 = vmul.f32 %v1378_v43, %v955_v5  ;;  %v972_v5 = vsub.f32 %v3039_v34, %v2918_v36 }
 0x228   :  { %v1532_v39 = vmul.f32 %v2738_v35, %v1499_v53 }
 0x22a   :  { %v1565_v13 = vadd.f32 %v2751_v46, %v1532_v39  ;;  %v1373_v7 = vpop.permute.xlu1 %1372  ;;  %v924_v0 = vpop.permute.xlu2 %923 }
 0x22b   :  { %v1498_v52 = vmul.f32 %v1373_v7, %v954_v3  ;;  %v973_v50 = vsub.f32 %v3038_v25, %v924_v0 }
 0x22c   :  { %1597 = vst [vmem:[#allocation8 + $0x48] sm:$0xff] %v1565_v13  ;;  %v3041_v13 = vld [vmem:[#allocation26_spill] sm:$0xff] }
 0x22d   :  { %v1531_v12 = vmul.f32 %v2738_v35, %v1498_v52  ;;  %v1453_v56 = vpop.permute.xlu0 %1452 }
 0x22e   :  { %v1514_v20 = vmul.f32 %v1453_v56, %v970_v58 }
 0x22f   :  { %v1564_v2 = vadd.f32 %v2751_v46, %v1531_v12 }
 0x230   :  { %v1547_v48 = vmul.f32 %v2738_v35, %v1514_v20 }
 0x231   :  { %1596 = vst [vmem:[#allocation8 + $0x40] sm:$0xff] %v1564_v2  ;;  %v3042_v2 = vld [vmem:[#allocation21_spill] sm:$0xff] }
 0x232   :  { %v1580_v26 = vadd.f32 %v2751_v46, %v1547_v48  ;;  %v1448_v60 = vpop.permute.xlu1 %1447  ;;  %v1383_v24 = vpop.permute.xlu2 %1382 }
 0x233   :  { %v1513_v9 = vmul.f32 %v1448_v60, %v969_v49  ;;  %v1500_v19 = vmul.f32 %v1383_v24, %v956_v1  ;;  %v3043_v1 = vld [vmem:[#allocation25_spill] sm:$0xff] }
 0x234   :  { %1612 = vst [vmem:[#allocation8 + $0xc0] sm:$0xff] %v1580_v26 }
 0x235   :  { %v1546_v27 = vmul.f32 %v2738_v35, %v1513_v9  ;;  %v2936_v62 = vpop.permute.xlu0 %858  ;;  %v1533_v31 = vmul.f32 %v2738_v35, %v1500_v19 }
 0x237   :  { %v1579_v57 = vadd.f32 %v2751_v46, %v1546_v27  ;;  %v1566_v14 = vadd.f32 %v2751_v46, %v1533_v31 }
 0x239   :  { %1611 = vst [vmem:[#allocation8 + $0xb8] sm:$0xff] %v1579_v57  ;;  %v3044_v57 = vld [vmem:[#allocation24_spill] sm:$0xff] }
 0x23a   :  { %1598 = vst [vmem:[#allocation8 + $0x50] sm:$0xff] %v1566_v14  ;;  %v854_v45 = vpop.permute.xlu1 %853  ;;  %v1458_v18 = vpop.permute.xlu2 %1457  ;;  %v960_v14 = vsub.f32 %v3044_v57, %v2936_v62  ;;  %v3046_v62 = vld [vmem:[#allocation23_spill] sm:$0xff] }
 0x23b   :  { %v1515_v10 = vmul.f32 %v1458_v18, %v971_v28  ;;  %v959_v43 = vsub.f32 %v3040_v55, %v854_v45 }
 0x23d   :  { %v2942_v21 = vpop.permute.xlu0 %933  ;;  %v1548_v63 = vmul.f32 %v2738_v35, %v1515_v10 }
 0x23f   :  { %v1581_v38 = vadd.f32 %v2751_v46, %v1548_v63 }
 0x241   :  { %1613 = vst [vmem:[#allocation8 + $0xc8] sm:$0xff] %v1581_v38 }
 0x242   :  { %v929_v37 = vpop.permute.xlu1 %928  ;;  %v864_v15 = vpop.permute.xlu2 %863 }
 0x243   :  { %v961_v7 = vsub.f32 %v3041_v13, %v864_v15  ;;  %v974_v48 = vsub.f32 %v3042_v2, %v929_v37 }
 0x245   :  { %v1393_v47 = vpop.permute.xlu0 %1392 }
 0x246   :  { %v1502_v42 = vmul.f32 %v1393_v47, %v958_v30  ;;  %v975_v47 = vsub.f32 %v3046_v62, %v2942_v21 }
 0x248   :  { %v1535_v44 = vmul.f32 %v2738_v35, %v1502_v42 }
 0x24a   :  { %v1568_v41 = vadd.f32 %v2751_v46, %v1535_v44  ;;  %v1388_v61 = vpop.permute.xlu1 %1387  ;;  %v939_v59 = vpop.permute.xlu2 %938 }
 0x24b   :  { %v1501_v54 = vmul.f32 %v1388_v61, %v957_v33  ;;  %v976_v26 = vsub.f32 %v3043_v1, %v939_v59 }
 0x24c   :  { %1600 = vst [vmem:[#allocation8 + $0x60] sm:$0xff] %v1568_v41 }
 0x24d   :  { %v1534_v23 = vmul.f32 %v2738_v35, %v1501_v54  ;;  %v1468_v16 = vpop.permute.xlu0 %1467 }
 0x24e   :  { %v1517_v6 = vmul.f32 %v1468_v16, %v973_v50 }
 0x24f   :  { %v1567_v40 = vadd.f32 %v2751_v46, %v1534_v23 }
 0x250   :  { %v1550_v4 = vmul.f32 %v2738_v35, %v1517_v6 }
 0x251   :  { %1599 = vst [vmem:[#allocation8 + $0x58] sm:$0xff] %v1567_v40 }
 0x252   :  { %v1583_v53 = vadd.f32 %v2751_v46, %v1550_v4  ;;  %v1463_v39 = vpop.permute.xlu1 %1462  ;;  %v1398_v3 = vpop.permute.xlu2 %1397 }
 0x253   :  { %v1516_v17 = vmul.f32 %v1463_v39, %v972_v5  ;;  %v1503_v52 = vmul.f32 %v1398_v3, %v959_v43 }
 0x254   :  { %1615 = vst [vmem:[#allocation8 + $0xd8] sm:$0xff] %v1583_v53 }
 0x255   :  { %v1549_v0 = vmul.f32 %v2738_v35, %v1516_v17  ;;  %v1408_v29 = vpop.permute.xlu0 %1407  ;;  %v1536_v58 = vmul.f32 %v2738_v35, %v1503_v52 }
 0x256   :  { %v1505_v12 = vmul.f32 %v1408_v29, %v961_v7 }
 0x257   :  { %v1582_v36 = vadd.f32 %v2751_v46, %v1549_v0  ;;  %v1569_v56 = vadd.f32 %v2751_v46, %v1536_v58 }
 0x258   :  { %v1538_v20 = vmul.f32 %v2738_v35, %v1505_v12 }
 0x259   :  { %1614 = vst [vmem:[#allocation8 + $0xd0] sm:$0xff] %v1582_v36 }
 0x25a   :  { %1601 = vst [vmem:[#allocation8 + $0x68] sm:$0xff] %v1569_v56  ;;  %v1571_v8 = vadd.f32 %v2751_v46, %v1538_v20  ;;  %v944_v49 = vpop.permute.xlu1 %943  ;;  %v1473_v32 = vpop.permute.xlu2 %1472 }
 0x25b   :  { %v1518_v60 = vmul.f32 %v1473_v32, %v974_v48  ;;  %v977_v28 = vsub.f32 %v3045_v22, %v944_v49 }
 0x25c   :  { %1603 = vst [vmem:[#allocation8 + $0x78] sm:$0xff] %v1571_v8 }
 0x25d   :  { %v1483_v9 = vpop.permute.xlu0 %1482  ;;  %v1551_v24 = vmul.f32 %v2738_v35, %v1518_v60 }
 0x25e   :  { %v1520_v19 = vmul.f32 %v1483_v9, %v976_v26 }
 0x25f   :  { %v1584_v27 = vadd.f32 %v2751_v46, %v1551_v24 }
 0x260   :  { %v1553_v31 = vmul.f32 %v2738_v35, %v1520_v19 }
 0x261   :  { %1616 = vst [vmem:[#allocation8 + $0xe0] sm:$0xff] %v1584_v27 }
 0x262   :  { %v1586_v45 = vadd.f32 %v2751_v46, %v1553_v31  ;;  %v1403_v18 = vpop.permute.xlu1 %1402  ;;  %v1488_v63 = vpop.permute.xlu2 %1487 }
 0x263   :  { %v1504_v10 = vmul.f32 %v1403_v18, %v960_v14  ;;  %v1521_v38 = vmul.f32 %v1488_v63, %v977_v28 }
 0x264   :  { %1618 = vst [vmem:[#allocation8 + $0xf0] sm:$0xff] %v1586_v45 }
 0x265   :  { %v1537_v37 = vmul.f32 %v2738_v35, %v1504_v10  ;;  %v1554_v15 = vmul.f32 %v2738_v35, %v1521_v38 }
 0x267   :  { %v1570_v51 = vadd.f32 %v2751_v46, %v1537_v37  ;;  %v1587_v30 = vadd.f32 %v2751_v46, %v1554_v15 }
 0x269   :  { %1602 = vst [vmem:[#allocation8 + $0x70] sm:$0xff] %v1570_v51 }
 0x26a   :  { %1619 = vst [vmem:[#allocation8 + $0xf8] sm:$0xff] %v1587_v30  ;;  %v1478_v42 = vpop.permute.xlu1 %1477 }
 0x26b   :  { %v1519_v44 = vmul.f32 %v1478_v42, %v975_v47 }
 0x26d   :  { %v1552_v11 = vmul.f32 %v2738_v35, %v1519_v44 }
 0x26f   :  { %v1585_v33 = vadd.f32 %v2751_v46, %v1552_v11 }
 0x271   :  { %1617 = vst [vmem:[#allocation8 + $0xe8] sm:$0xff] %v1585_v33 }
 0x272   :  { %1632 = dma.vmem_to_hbm [thread:$0]  %s1625_s27, 4096, %s1627_s30, [#allocation4], %s1917_s20, %s1917_s20, %s1918_s21  }
 0x273   :  { %1914 = dma.done.wait [#allocation4], 4096  }
 0x274   :  { %1915 = vsyncadd [#allocation4], 4294963200 }
 0x275   :  { %1637 = vsyncpa [#allocation3], 1 }
 0x276   :  { %1638 = vsyncpa [#allocation6], 1 }
 0x277   :  { %1639 = vsyncpa [#allocation4], 1 }

</bundles_post_ra>
